<compile_context>
chip_gen: v7x
topology: tpu7x:2x2x1
jax: 0.10.0
libtpu: 0.0.40
codegen_flags: <defaults>
</compile_context>

<pallas_src>
import math

import numpy as np
import jax
import jax.numpy as jnp
from jax.experimental import pallas as pl
from jax.experimental.pallas import tpu as pltpu


# ----------------------------------------------------------------- fused kernel
def make_fused_kernel(T, B, H, n_mlp):
    """Whole CriticNetwork2 forward in one kernel.

    Ref layout (all VMEM, no grid):
      refs[0]              x2d  (T*B, F)  time-major flattened input
      refs[1:6]            layer-0 packed LSTM weights:
                             W_ih_fwd_pad (In, 8H), W_ih_bwd_pad (In, 8H),
                             bias_fwd_pad (1, 8H),  bias_bwd_pad (1, 8H),
                             W_hh_comb    (2H, 8H)  (block-diag fwd/bwd, gates i,f,g,o)
      refs[6:11]           layer-1 packed LSTM weights (same layout, In = 2H)
      next 2*n_mlp refs    (W, b) per Linear, W as (in, out), b as (1, out)
      refs[11 + 2*n_mlp]   output (B, out_dim)
    """
    TWO_H = 2 * H

    def run_layer(x2d, wihf_ref, wihb_ref, bf_ref, bb_ref, whh_ref):
        # Hoisted, bias-folded input projections: one (T*B, In) @ (In, 8H) matmul per direction,
        # computed off the recurrent critical path. Zero-padded into the combined gate layout.
        pre_f = jnp.dot(x2d, wihf_ref[...], preferred_element_type=jnp.float32) + bf_ref[...]
        pre_b = jnp.dot(x2d, wihb_ref[...], preferred_element_type=jnp.float32) + bb_ref[...]
        whh = whh_ref[...]                               # (2H, 8H), hoisted weight load

        h = None
        c = None
        hs = [None] * T
        for s in range(T):                               # fully unrolled; fwd @ t=s, bwd @ t=T-1-s
            t_f, t_b = s, T - 1 - s
            px = pre_f[t_f * B:(t_f + 1) * B] + pre_b[t_b * B:(t_b + 1) * B]   # (B, 8H)
            if s == 0:
                pre = px                                  # h == 0: skip recurrent matmul
            else:
                pre = px + jnp.dot(h, whh, preferred_element_type=jnp.float32)
            i = jax.nn.sigmoid(pre[:, 0 * TWO_H:1 * TWO_H])
            g = jnp.tanh(pre[:, 2 * TWO_H:3 * TWO_H])
            o = jax.nn.sigmoid(pre[:, 3 * TWO_H:4 * TWO_H])
            if s == 0:
                c = i * g                                 # c == 0: f-gate contribution vanishes
            else:
                f = jax.nn.sigmoid(pre[:, 1 * TWO_H:2 * TWO_H])
                c = f * c + i * g
            h = o * jnp.tanh(c)                           # (B, 2H) = [h_fwd | h_bwd]
            hs[s] = h

        # Re-align time: output at time t = [fwd half of hs[t] | bwd half of hs[T-1-t]]
        # via one lane-masked select per t (no slice+concat in the hot loop).
        lane = jax.lax.broadcasted_iota(jnp.int32, (B, TWO_H), 1)
        fwd_lane = lane < H
        return [jnp.where(fwd_lane, hs[t], hs[T - 1 - t]) for t in range(T)]

    def kernel(*refs):
        x_ref = refs[0]
        l0 = refs[1:6]
        l1 = refs[6:11]
        mlp = refs[11:11 + 2 * n_mlp]
        out_ref = refs[11 + 2 * n_mlp]

        x0 = x_ref[...]                                   # (T*B, F)
        y0 = run_layer(x0, *l0)                           # T x (B, 2H)

        # Layer-1 input: time-major (T*B, 2H) slab (one-time sublane concat).
        x1 = jnp.concatenate(y0, axis=0)
        y1 = run_layer(x1, *l1)                           # T x (B, 2H)

        # nn.Flatten(lstm output): lane-dense (B, T*2H) = (B, 128) built once inside the kernel.
        h = jnp.concatenate(y1, axis=-1)

        # Critic MLP: Linear+ReLU x (n_mlp-1), then final Linear (no ReLU).
        for li in range(n_mlp):
            w = mlp[2 * li][...]
            bb = mlp[2 * li + 1][...]
            h = jnp.dot(h, w, preferred_element_type=jnp.float32) + bb
            if li < n_mlp - 1:
                h = jnp.maximum(h, 0.0)
        out_ref[...] = h

    return kernel


def critic_forward(external, packed_lstm, mlp_ws, mlp_bs):
    """external: (B, T, F) float32 (batch_first, like the PyTorch module)."""
    B, T, F = external.shape
    H = packed_lstm[0][4].shape[0] // 2                   # W_hh_comb is (2H, 8H)
    n_mlp = len(mlp_ws)
    out_dim = mlp_ws[-1].shape[1]

    # Layout plumbing only: present a time-major (T*B, F) slab to the fused kernel.
    x2d = jnp.transpose(external, (1, 0, 2)).reshape(T * B, F)

    args = [x2d]
    for layer in packed_lstm:
        args += list(layer)
    for w, b in zip(mlp_ws, mlp_bs):
        args += [w, b]

    vmem = pl.BlockSpec(memory_space=pltpu.MemorySpace.VMEM)
    return pl.pallas_call(
        make_fused_kernel(T, B, H, n_mlp),
        out_shape=jax.ShapeDtypeStruct((B, out_dim), jnp.float32),
        in_specs=[vmem] * len(args),
        out_specs=vmem,
    )(*args)


# ------------------------------------------------------------ parameter init / packing
def init_params(key, input_dim, max_length, out_put_dim=1):
    """Natural per-gate params: [layer][dir] = (W_ih (4,In,H), W_hh (4,H,H), b (4,1,H));
    gate order i,f,g,o; b = b_ih + b_hh pre-combined (matches nn.LSTM semantics)."""
    H = 2 * input_dim
    k = key
    lstm_params = []
    for layer in range(2):
        in_sz = input_dim if layer == 0 else 2 * H
        dirs = []
        for _direction in range(2):
            k, k1, k2, k3, k4 = jax.random.split(k, 5)
            bound = 1.0 / math.sqrt(H)
            w_ih = jax.random.uniform(k1, (4, in_sz, H), jnp.float32, -bound, bound)
            w_hh = jax.random.uniform(k2, (4, H, H), jnp.float32, -bound, bound)
            b_ih = jax.random.uniform(k3, (4, 1, H), jnp.float32, -bound, bound)
            b_hh = jax.random.uniform(k4, (4, 1, H), jnp.float32, -bound, bound)
            dirs.append((w_ih, w_hh, b_ih + b_hh))
        lstm_params.append(dirs)

    # Replicates CriticNetwork2.__init__ default hidden_dims construction.
    in_dim = input_dim * max_length * 4
    main_size = 2 * in_dim
    last_layer = 8 if out_put_dim == 1 else out_put_dim
    hidden_dims = []
    while main_size > last_layer:
        hidden_dims.append(int(main_size))
        main_size = int(main_size / 2)
    dims = [in_dim] + hidden_dims + [out_put_dim]

    mlp_ws, mlp_bs = [], []
    for i in range(len(dims) - 1):
        k, k1, k2 = jax.random.split(k, 3)
        bound = 1.0 / math.sqrt(dims[i])
        w = jax.random.uniform(k1, (dims[i], dims[i + 1]), jnp.float32, -bound, bound)
        b = jax.random.uniform(k2, (1, dims[i + 1]), jnp.float32, -bound, bound)
        mlp_ws.append(w)
        mlp_bs.append(b)
    return lstm_params, mlp_ws, mlp_bs


def pack_layer(layer, H):
    """Pack one bidirectional layer into the combined kernel layout.

    Combined lane layout, per gate g in (i,f,g,o): lanes [g*2H : g*2H+H] = fwd, [g*2H+H : (g+1)*2H] = bwd.
    W_hh is block-diagonal so [h_fwd | h_bwd] @ W_hh_comb yields both directions' gate pre-activations
    in a single MXU matmul.
    """
    (wif, whf, bf), (wib, whb, bb) = layer
    In = int(wif.shape[1])
    wih_f = np.zeros((In, 8 * H), np.float32)
    wih_b = np.zeros((In, 8 * H), np.float32)
    bias_f = np.zeros((1, 8 * H), np.float32)
    bias_b = np.zeros((1, 8 * H), np.float32)
    whh_c = np.zeros((2 * H, 8 * H), np.float32)
    for g in range(4):
        lo = g * 2 * H
        wih_f[:, lo:lo + H] = np.asarray(wif[g])
        wih_b[:, lo + H:lo + 2 * H] = np.asarray(wib[g])
        bias_f[:, lo:lo + H] = np.asarray(bf[g][0])
        bias_b[:, lo + H:lo + 2 * H] = np.asarray(bb[g][0])
        whh_c[0:H, lo:lo + H] = np.asarray(whf[g])
        whh_c[H:2 * H, lo + H:lo + 2 * H] = np.asarray(whb[g])
    return (jnp.asarray(wih_f), jnp.asarray(wih_b),
            jnp.asarray(bias_f), jnp.asarray(bias_b), jnp.asarray(whh_c))


def pack_params(lstm_params):
    packed = []
    for layer in lstm_params:
        H = int(layer[0][1].shape[-1])
        packed.append(pack_layer(layer, H))
    return packed


# ------------------------------------------------------------- numpy reference
def _np_sigmoid(x):
    return 1.0 / (1.0 + np.exp(-x))


def reference_forward(external, lstm_params, mlp_ws, mlp_bs):
    x = np.asarray(external, np.float64)                 # (B, T, F)
    B, T, _ = x.shape
    h_seq = x
    for layer in lstm_params:
        outs = []
        for d, (w_ih, w_hh, b) in enumerate(layer):
            w_ih = np.asarray(w_ih, np.float64)           # (4, In, H)
            w_hh = np.asarray(w_hh, np.float64)           # (4, H, H)
            b = np.asarray(b, np.float64)                 # (4, 1, H)
            H = w_hh.shape[-1]
            order = range(T - 1, -1, -1) if d == 1 else range(T)
            h = np.zeros((B, H))
            c = np.zeros((B, H))
            out = np.zeros((B, T, H))
            for t in order:
                xt = h_seq[:, t]
                i = _np_sigmoid(xt @ w_ih[0] + h @ w_hh[0] + b[0])
                f = _np_sigmoid(xt @ w_ih[1] + h @ w_hh[1] + b[1])
                g = np.tanh(xt @ w_ih[2] + h @ w_hh[2] + b[2])
                o = _np_sigmoid(xt @ w_ih[3] + h @ w_hh[3] + b[3])
                c = f * c + i * g
                h = o * np.tanh(c)
                out[:, t] = h
            outs.append(out)
        h_seq = np.concatenate(outs, axis=-1)
    h = h_seq.reshape(B, -1)
    n = len(mlp_ws)
    for i, (w, bb) in enumerate(zip(mlp_ws, mlp_bs)):
        h = h @ np.asarray(w, np.float64) + np.asarray(bb, np.float64)
        if i < n - 1:
            h = np.maximum(h, 0.0)
    return h


# ------------------------------------------------------------------------ main
if __name__ == "__main__":
    input_dim = 4
    max_length = 8
    batch = 2

    key = jax.random.PRNGKey(0)
    k_params, k_x = jax.random.split(key)
    lstm_params, mlp_ws, mlp_bs = init_params(k_params, input_dim, max_length)
    packed_lstm = pack_params(lstm_params)
    external = jax.random.normal(k_x, (batch, max_length, input_dim), jnp.float32)

    fwd = jax.jit(critic_forward)
    out = fwd(external, packed_lstm, mlp_ws, mlp_bs)
    out = jax.block_until_ready(out)

    ref = reference_forward(external, lstm_params, mlp_ws, mlp_bs)
    assert out.shape == (batch, 1), out.shape
    np.testing.assert_allclose(np.asarray(out), ref, rtol=5e-2, atol=5e-2)

    print("KERNEL_OK")
</pallas_src>

<mosaic_0001>
module attributes {stable_mosaic.version = 11 : i64} {
  func.func @kernel(%arg0: memref<16x4xf32, #tpu.memory_space<vmem>>, %arg1: memref<4x64xf32, #tpu.memory_space<vmem>>, %arg2: memref<4x64xf32, #tpu.memory_space<vmem>>, %arg3: memref<1x64xf32, #tpu.memory_space<vmem>>, %arg4: memref<1x64xf32, #tpu.memory_space<vmem>>, %arg5: memref<16x64xf32, #tpu.memory_space<vmem>>, %arg6: memref<16x64xf32, #tpu.memory_space<vmem>>, %arg7: memref<16x64xf32, #tpu.memory_space<vmem>>, %arg8: memref<1x64xf32, #tpu.memory_space<vmem>>, %arg9: memref<1x64xf32, #tpu.memory_space<vmem>>, %arg10: memref<16x64xf32, #tpu.memory_space<vmem>>, %arg11: memref<128x256xf32, #tpu.memory_space<vmem>>, %arg12: memref<1x256xf32, #tpu.memory_space<vmem>>, %arg13: memref<256x128xf32, #tpu.memory_space<vmem>>, %arg14: memref<1x128xf32, #tpu.memory_space<vmem>>, %arg15: memref<128x64xf32, #tpu.memory_space<vmem>>, %arg16: memref<1x64xf32, #tpu.memory_space<vmem>>, %arg17: memref<64x32xf32, #tpu.memory_space<vmem>>, %arg18: memref<1x32xf32, #tpu.memory_space<vmem>>, %arg19: memref<32x16xf32, #tpu.memory_space<vmem>>, %arg20: memref<1x16xf32, #tpu.memory_space<vmem>>, %arg21: memref<16x1xf32, #tpu.memory_space<vmem>>, %arg22: memref<1x1xf32, #tpu.memory_space<vmem>>, %arg23: memref<2x1xf32, #tpu.memory_space<vmem>>) attributes {dimension_semantics = [], scalar_prefetch = 0 : i64, scratch_operands = 0 : i64, tpu.core_type = #tpu.core_type<tc>} {
    %c0 = arith.constant 0 : index
    %c0_0 = arith.constant 0 : index
    %0 = vector.load %arg0[%c0, %c0_0] : memref<16x4xf32, #tpu.memory_space<vmem>>, vector<16x4xf32>
    %c0_1 = arith.constant 0 : index
    %c0_2 = arith.constant 0 : index
    %1 = vector.load %arg1[%c0_1, %c0_2] : memref<4x64xf32, #tpu.memory_space<vmem>>, vector<4x64xf32>
    %cst = arith.constant dense<0.000000e+00> : vector<16x64xf32>
    %2 = tpu.matmul %0, %1, %cst {dimension_numbers = #tpu.dot_dimension_numbers<[1], [0], [0], [1], [0, 0, 1, 1], [], []>} : vector<16x4xf32>, vector<4x64xf32>, vector<16x64xf32> -> vector<16x64xf32>
    %c0_3 = arith.constant 0 : index
    %c0_4 = arith.constant 0 : index
    %3 = vector.load %arg3[%c0_3, %c0_4] : memref<1x64xf32, #tpu.memory_space<vmem>>, vector<1x64xf32>
    %4 = vector.broadcast %3 : vector<1x64xf32> to vector<16x64xf32>
    %5 = arith.addf %2, %4 : vector<16x64xf32>
    %c0_5 = arith.constant 0 : index
    %c0_6 = arith.constant 0 : index
    %6 = vector.load %arg2[%c0_5, %c0_6] : memref<4x64xf32, #tpu.memory_space<vmem>>, vector<4x64xf32>
    %cst_7 = arith.constant dense<0.000000e+00> : vector<16x64xf32>
    %7 = tpu.matmul %0, %6, %cst_7 {dimension_numbers = #tpu.dot_dimension_numbers<[1], [0], [0], [1], [0, 0, 1, 1], [], []>} : vector<16x4xf32>, vector<4x64xf32>, vector<16x64xf32> -> vector<16x64xf32>
    %c0_8 = arith.constant 0 : index
    %c0_9 = arith.constant 0 : index
    %8 = vector.load %arg4[%c0_8, %c0_9] : memref<1x64xf32, #tpu.memory_space<vmem>>, vector<1x64xf32>
    %9 = vector.broadcast %8 : vector<1x64xf32> to vector<16x64xf32>
    %10 = arith.addf %7, %9 : vector<16x64xf32>
    %c0_10 = arith.constant 0 : index
    %c0_11 = arith.constant 0 : index
    %11 = vector.load %arg5[%c0_10, %c0_11] : memref<16x64xf32, #tpu.memory_space<vmem>>, vector<16x64xf32>
    %12 = vector.extract_strided_slice %5 {offsets = [0, 0], sizes = [2, 64], strides = [1, 1]} : vector<16x64xf32> to vector<2x64xf32>
    %13 = vector.extract_strided_slice %10 {offsets = [14, 0], sizes = [2, 64], strides = [1, 1]} : vector<16x64xf32> to vector<2x64xf32>
    %14 = arith.addf %12, %13 : vector<2x64xf32>
    %15 = vector.extract_strided_slice %14 {offsets = [0, 0], sizes = [2, 16], strides = [1, 1]} : vector<2x64xf32> to vector<2x16xf32>
    %16 = arith.negf %15 : vector<2x16xf32>
    %17 = math.exp %16 : vector<2x16xf32>
    %cst_12 = arith.constant 1.000000e+00 : f32
    %18 = vector.broadcast %cst_12 : f32 to vector<2x16xf32>
    %19 = arith.addf %18, %17 : vector<2x16xf32>
    %20 = arith.divf %18, %19 : vector<2x16xf32>
    %21 = vector.extract_strided_slice %14 {offsets = [0, 32], sizes = [2, 16], strides = [1, 1]} : vector<2x64xf32> to vector<2x16xf32>
    %22 = math.tanh %21 : vector<2x16xf32>
    %23 = vector.extract_strided_slice %14 {offsets = [0, 48], sizes = [2, 16], strides = [1, 1]} : vector<2x64xf32> to vector<2x16xf32>
    %24 = arith.negf %23 : vector<2x16xf32>
    %25 = math.exp %24 : vector<2x16xf32>
    %cst_13 = arith.constant 1.000000e+00 : f32
    %26 = vector.broadcast %cst_13 : f32 to vector<2x16xf32>
    %27 = arith.addf %26, %25 : vector<2x16xf32>
    %28 = arith.divf %26, %27 : vector<2x16xf32>
    %29 = arith.mulf %20, %22 : vector<2x16xf32>
    %30 = math.tanh %29 : vector<2x16xf32>
    %31 = arith.mulf %28, %30 : vector<2x16xf32>
    %32 = vector.extract_strided_slice %5 {offsets = [2, 0], sizes = [2, 64], strides = [1, 1]} : vector<16x64xf32> to vector<2x64xf32>
    %33 = vector.extract_strided_slice %10 {offsets = [12, 0], sizes = [2, 64], strides = [1, 1]} : vector<16x64xf32> to vector<2x64xf32>
    %34 = arith.addf %32, %33 : vector<2x64xf32>
    %cst_14 = arith.constant dense<0.000000e+00> : vector<2x64xf32>
    %35 = tpu.matmul %31, %11, %cst_14 {dimension_numbers = #tpu.dot_dimension_numbers<[1], [0], [0], [1], [0, 0, 1, 1], [], []>} : vector<2x16xf32>, vector<16x64xf32>, vector<2x64xf32> -> vector<2x64xf32>
    %36 = arith.addf %34, %35 : vector<2x64xf32>
    %37 = vector.extract_strided_slice %36 {offsets = [0, 0], sizes = [2, 16], strides = [1, 1]} : vector<2x64xf32> to vector<2x16xf32>
    %38 = arith.negf %37 : vector<2x16xf32>
    %39 = math.exp %38 : vector<2x16xf32>
    %cst_15 = arith.constant 1.000000e+00 : f32
    %40 = vector.broadcast %cst_15 : f32 to vector<2x16xf32>
    %41 = arith.addf %40, %39 : vector<2x16xf32>
    %42 = arith.divf %40, %41 : vector<2x16xf32>
    %43 = vector.extract_strided_slice %36 {offsets = [0, 32], sizes = [2, 16], strides = [1, 1]} : vector<2x64xf32> to vector<2x16xf32>
    %44 = math.tanh %43 : vector<2x16xf32>
    %45 = vector.extract_strided_slice %36 {offsets = [0, 48], sizes = [2, 16], strides = [1, 1]} : vector<2x64xf32> to vector<2x16xf32>
    %46 = arith.negf %45 : vector<2x16xf32>
    %47 = math.exp %46 : vector<2x16xf32>
    %cst_16 = arith.constant 1.000000e+00 : f32
    %48 = vector.broadcast %cst_16 : f32 to vector<2x16xf32>
    %49 = arith.addf %48, %47 : vector<2x16xf32>
    %50 = arith.divf %48, %49 : vector<2x16xf32>
    %51 = vector.extract_strided_slice %36 {offsets = [0, 16], sizes = [2, 16], strides = [1, 1]} : vector<2x64xf32> to vector<2x16xf32>
    %52 = arith.negf %51 : vector<2x16xf32>
    %53 = math.exp %52 : vector<2x16xf32>
    %cst_17 = arith.constant 1.000000e+00 : f32
    %54 = vector.broadcast %cst_17 : f32 to vector<2x16xf32>
    %55 = arith.addf %54, %53 : vector<2x16xf32>
    %56 = arith.divf %54, %55 : vector<2x16xf32>
    %57 = arith.mulf %56, %29 : vector<2x16xf32>
    %58 = arith.mulf %42, %44 : vector<2x16xf32>
    %59 = arith.addf %57, %58 : vector<2x16xf32>
    %60 = math.tanh %59 : vector<2x16xf32>
    %61 = arith.mulf %50, %60 : vector<2x16xf32>
    %62 = vector.extract_strided_slice %5 {offsets = [4, 0], sizes = [2, 64], strides = [1, 1]} : vector<16x64xf32> to vector<2x64xf32>
    %63 = vector.extract_strided_slice %10 {offsets = [10, 0], sizes = [2, 64], strides = [1, 1]} : vector<16x64xf32> to vector<2x64xf32>
    %64 = arith.addf %62, %63 : vector<2x64xf32>
    %cst_18 = arith.constant dense<0.000000e+00> : vector<2x64xf32>
    %65 = tpu.matmul %61, %11, %cst_18 {dimension_numbers = #tpu.dot_dimension_numbers<[1], [0], [0], [1], [0, 0, 1, 1], [], []>} : vector<2x16xf32>, vector<16x64xf32>, vector<2x64xf32> -> vector<2x64xf32>
    %66 = arith.addf %64, %65 : vector<2x64xf32>
    %67 = vector.extract_strided_slice %66 {offsets = [0, 0], sizes = [2, 16], strides = [1, 1]} : vector<2x64xf32> to vector<2x16xf32>
    %68 = arith.negf %67 : vector<2x16xf32>
    %69 = math.exp %68 : vector<2x16xf32>
    %cst_19 = arith.constant 1.000000e+00 : f32
    %70 = vector.broadcast %cst_19 : f32 to vector<2x16xf32>
    %71 = arith.addf %70, %69 : vector<2x16xf32>
    %72 = arith.divf %70, %71 : vector<2x16xf32>
    %73 = vector.extract_strided_slice %66 {offsets = [0, 32], sizes = [2, 16], strides = [1, 1]} : vector<2x64xf32> to vector<2x16xf32>
    %74 = math.tanh %73 : vector<2x16xf32>
    %75 = vector.extract_strided_slice %66 {offsets = [0, 48], sizes = [2, 16], strides = [1, 1]} : vector<2x64xf32> to vector<2x16xf32>
    %76 = arith.negf %75 : vector<2x16xf32>
    %77 = math.exp %76 : vector<2x16xf32>
    %cst_20 = arith.constant 1.000000e+00 : f32
    %78 = vector.broadcast %cst_20 : f32 to vector<2x16xf32>
    %79 = arith.addf %78, %77 : vector<2x16xf32>
    %80 = arith.divf %78, %79 : vector<2x16xf32>
    %81 = vector.extract_strided_slice %66 {offsets = [0, 16], sizes = [2, 16], strides = [1, 1]} : vector<2x64xf32> to vector<2x16xf32>
    %82 = arith.negf %81 : vector<2x16xf32>
    %83 = math.exp %82 : vector<2x16xf32>
    %cst_21 = arith.constant 1.000000e+00 : f32
    %84 = vector.broadcast %cst_21 : f32 to vector<2x16xf32>
    %85 = arith.addf %84, %83 : vector<2x16xf32>
    %86 = arith.divf %84, %85 : vector<2x16xf32>
    %87 = arith.mulf %86, %59 : vector<2x16xf32>
    %88 = arith.mulf %72, %74 : vector<2x16xf32>
    %89 = arith.addf %87, %88 : vector<2x16xf32>
    %90 = math.tanh %89 : vector<2x16xf32>
    %91 = arith.mulf %80, %90 : vector<2x16xf32>
    %92 = vector.extract_strided_slice %5 {offsets = [6, 0], sizes = [2, 64], strides = [1, 1]} : vector<16x64xf32> to vector<2x64xf32>
    %93 = vector.extract_strided_slice %10 {offsets = [8, 0], sizes = [2, 64], strides = [1, 1]} : vector<16x64xf32> to vector<2x64xf32>
    %94 = arith.addf %92, %93 : vector<2x64xf32>
    %cst_22 = arith.constant dense<0.000000e+00> : vector<2x64xf32>
    %95 = tpu.matmul %91, %11, %cst_22 {dimension_numbers = #tpu.dot_dimension_numbers<[1], [0], [0], [1], [0, 0, 1, 1], [], []>} : vector<2x16xf32>, vector<16x64xf32>, vector<2x64xf32> -> vector<2x64xf32>
    %96 = arith.addf %94, %95 : vector<2x64xf32>
    %97 = vector.extract_strided_slice %96 {offsets = [0, 0], sizes = [2, 16], strides = [1, 1]} : vector<2x64xf32> to vector<2x16xf32>
    %98 = arith.negf %97 : vector<2x16xf32>
    %99 = math.exp %98 : vector<2x16xf32>
    %cst_23 = arith.constant 1.000000e+00 : f32
    %100 = vector.broadcast %cst_23 : f32 to vector<2x16xf32>
    %101 = arith.addf %100, %99 : vector<2x16xf32>
    %102 = arith.divf %100, %101 : vector<2x16xf32>
    %103 = vector.extract_strided_slice %96 {offsets = [0, 32], sizes = [2, 16], strides = [1, 1]} : vector<2x64xf32> to vector<2x16xf32>
    %104 = math.tanh %103 : vector<2x16xf32>
    %105 = vector.extract_strided_slice %96 {offsets = [0, 48], sizes = [2, 16], strides = [1, 1]} : vector<2x64xf32> to vector<2x16xf32>
    %106 = arith.negf %105 : vector<2x16xf32>
    %107 = math.exp %106 : vector<2x16xf32>
    %cst_24 = arith.constant 1.000000e+00 : f32
    %108 = vector.broadcast %cst_24 : f32 to vector<2x16xf32>
    %109 = arith.addf %108, %107 : vector<2x16xf32>
    %110 = arith.divf %108, %109 : vector<2x16xf32>
    %111 = vector.extract_strided_slice %96 {offsets = [0, 16], sizes = [2, 16], strides = [1, 1]} : vector<2x64xf32> to vector<2x16xf32>
    %112 = arith.negf %111 : vector<2x16xf32>
    %113 = math.exp %112 : vector<2x16xf32>
    %cst_25 = arith.constant 1.000000e+00 : f32
    %114 = vector.broadcast %cst_25 : f32 to vector<2x16xf32>
    %115 = arith.addf %114, %113 : vector<2x16xf32>
    %116 = arith.divf %114, %115 : vector<2x16xf32>
    %117 = arith.mulf %116, %89 : vector<2x16xf32>
    %118 = arith.mulf %102, %104 : vector<2x16xf32>
    %119 = arith.addf %117, %118 : vector<2x16xf32>
    %120 = math.tanh %119 : vector<2x16xf32>
    %121 = arith.mulf %110, %120 : vector<2x16xf32>
    %122 = vector.extract_strided_slice %5 {offsets = [8, 0], sizes = [2, 64], strides = [1, 1]} : vector<16x64xf32> to vector<2x64xf32>
    %123 = vector.extract_strided_slice %10 {offsets = [6, 0], sizes = [2, 64], strides = [1, 1]} : vector<16x64xf32> to vector<2x64xf32>
    %124 = arith.addf %122, %123 : vector<2x64xf32>
    %cst_26 = arith.constant dense<0.000000e+00> : vector<2x64xf32>
    %125 = tpu.matmul %121, %11, %cst_26 {dimension_numbers = #tpu.dot_dimension_numbers<[1], [0], [0], [1], [0, 0, 1, 1], [], []>} : vector<2x16xf32>, vector<16x64xf32>, vector<2x64xf32> -> vector<2x64xf32>
    %126 = arith.addf %124, %125 : vector<2x64xf32>
    %127 = vector.extract_strided_slice %126 {offsets = [0, 0], sizes = [2, 16], strides = [1, 1]} : vector<2x64xf32> to vector<2x16xf32>
    %128 = arith.negf %127 : vector<2x16xf32>
    %129 = math.exp %128 : vector<2x16xf32>
    %cst_27 = arith.constant 1.000000e+00 : f32
    %130 = vector.broadcast %cst_27 : f32 to vector<2x16xf32>
    %131 = arith.addf %130, %129 : vector<2x16xf32>
    %132 = arith.divf %130, %131 : vector<2x16xf32>
    %133 = vector.extract_strided_slice %126 {offsets = [0, 32], sizes = [2, 16], strides = [1, 1]} : vector<2x64xf32> to vector<2x16xf32>
    %134 = math.tanh %133 : vector<2x16xf32>
    %135 = vector.extract_strided_slice %126 {offsets = [0, 48], sizes = [2, 16], strides = [1, 1]} : vector<2x64xf32> to vector<2x16xf32>
    %136 = arith.negf %135 : vector<2x16xf32>
    %137 = math.exp %136 : vector<2x16xf32>
    %cst_28 = arith.constant 1.000000e+00 : f32
    %138 = vector.broadcast %cst_28 : f32 to vector<2x16xf32>
    %139 = arith.addf %138, %137 : vector<2x16xf32>
    %140 = arith.divf %138, %139 : vector<2x16xf32>
    %141 = vector.extract_strided_slice %126 {offsets = [0, 16], sizes = [2, 16], strides = [1, 1]} : vector<2x64xf32> to vector<2x16xf32>
    %142 = arith.negf %141 : vector<2x16xf32>
    %143 = math.exp %142 : vector<2x16xf32>
    %cst_29 = arith.constant 1.000000e+00 : f32
    %144 = vector.broadcast %cst_29 : f32 to vector<2x16xf32>
    %145 = arith.addf %144, %143 : vector<2x16xf32>
    %146 = arith.divf %144, %145 : vector<2x16xf32>
    %147 = arith.mulf %146, %119 : vector<2x16xf32>
    %148 = arith.mulf %132, %134 : vector<2x16xf32>
    %149 = arith.addf %147, %148 : vector<2x16xf32>
    %150 = math.tanh %149 : vector<2x16xf32>
    %151 = arith.mulf %140, %150 : vector<2x16xf32>
    %152 = vector.extract_strided_slice %5 {offsets = [10, 0], sizes = [2, 64], strides = [1, 1]} : vector<16x64xf32> to vector<2x64xf32>
    %153 = vector.extract_strided_slice %10 {offsets = [4, 0], sizes = [2, 64], strides = [1, 1]} : vector<16x64xf32> to vector<2x64xf32>
    %154 = arith.addf %152, %153 : vector<2x64xf32>
    %cst_30 = arith.constant dense<0.000000e+00> : vector<2x64xf32>
    %155 = tpu.matmul %151, %11, %cst_30 {dimension_numbers = #tpu.dot_dimension_numbers<[1], [0], [0], [1], [0, 0, 1, 1], [], []>} : vector<2x16xf32>, vector<16x64xf32>, vector<2x64xf32> -> vector<2x64xf32>
    %156 = arith.addf %154, %155 : vector<2x64xf32>
    %157 = vector.extract_strided_slice %156 {offsets = [0, 0], sizes = [2, 16], strides = [1, 1]} : vector<2x64xf32> to vector<2x16xf32>
    %158 = arith.negf %157 : vector<2x16xf32>
    %159 = math.exp %158 : vector<2x16xf32>
    %cst_31 = arith.constant 1.000000e+00 : f32
    %160 = vector.broadcast %cst_31 : f32 to vector<2x16xf32>
    %161 = arith.addf %160, %159 : vector<2x16xf32>
    %162 = arith.divf %160, %161 : vector<2x16xf32>
    %163 = vector.extract_strided_slice %156 {offsets = [0, 32], sizes = [2, 16], strides = [1, 1]} : vector<2x64xf32> to vector<2x16xf32>
    %164 = math.tanh %163 : vector<2x16xf32>
    %165 = vector.extract_strided_slice %156 {offsets = [0, 48], sizes = [2, 16], strides = [1, 1]} : vector<2x64xf32> to vector<2x16xf32>
    %166 = arith.negf %165 : vector<2x16xf32>
    %167 = math.exp %166 : vector<2x16xf32>
    %cst_32 = arith.constant 1.000000e+00 : f32
    %168 = vector.broadcast %cst_32 : f32 to vector<2x16xf32>
    %169 = arith.addf %168, %167 : vector<2x16xf32>
    %170 = arith.divf %168, %169 : vector<2x16xf32>
    %171 = vector.extract_strided_slice %156 {offsets = [0, 16], sizes = [2, 16], strides = [1, 1]} : vector<2x64xf32> to vector<2x16xf32>
    %172 = arith.negf %171 : vector<2x16xf32>
    %173 = math.exp %172 : vector<2x16xf32>
    %cst_33 = arith.constant 1.000000e+00 : f32
    %174 = vector.broadcast %cst_33 : f32 to vector<2x16xf32>
    %175 = arith.addf %174, %173 : vector<2x16xf32>
    %176 = arith.divf %174, %175 : vector<2x16xf32>
    %177 = arith.mulf %176, %149 : vector<2x16xf32>
    %178 = arith.mulf %162, %164 : vector<2x16xf32>
    %179 = arith.addf %177, %178 : vector<2x16xf32>
    %180 = math.tanh %179 : vector<2x16xf32>
    %181 = arith.mulf %170, %180 : vector<2x16xf32>
    %182 = vector.extract_strided_slice %5 {offsets = [12, 0], sizes = [2, 64], strides = [1, 1]} : vector<16x64xf32> to vector<2x64xf32>
    %183 = vector.extract_strided_slice %10 {offsets = [2, 0], sizes = [2, 64], strides = [1, 1]} : vector<16x64xf32> to vector<2x64xf32>
    %184 = arith.addf %182, %183 : vector<2x64xf32>
    %cst_34 = arith.constant dense<0.000000e+00> : vector<2x64xf32>
    %185 = tpu.matmul %181, %11, %cst_34 {dimension_numbers = #tpu.dot_dimension_numbers<[1], [0], [0], [1], [0, 0, 1, 1], [], []>} : vector<2x16xf32>, vector<16x64xf32>, vector<2x64xf32> -> vector<2x64xf32>
    %186 = arith.addf %184, %185 : vector<2x64xf32>
    %187 = vector.extract_strided_slice %186 {offsets = [0, 0], sizes = [2, 16], strides = [1, 1]} : vector<2x64xf32> to vector<2x16xf32>
    %188 = arith.negf %187 : vector<2x16xf32>
    %189 = math.exp %188 : vector<2x16xf32>
    %cst_35 = arith.constant 1.000000e+00 : f32
    %190 = vector.broadcast %cst_35 : f32 to vector<2x16xf32>
    %191 = arith.addf %190, %189 : vector<2x16xf32>
    %192 = arith.divf %190, %191 : vector<2x16xf32>
    %193 = vector.extract_strided_slice %186 {offsets = [0, 32], sizes = [2, 16], strides = [1, 1]} : vector<2x64xf32> to vector<2x16xf32>
    %194 = math.tanh %193 : vector<2x16xf32>
    %195 = vector.extract_strided_slice %186 {offsets = [0, 48], sizes = [2, 16], strides = [1, 1]} : vector<2x64xf32> to vector<2x16xf32>
    %196 = arith.negf %195 : vector<2x16xf32>
    %197 = math.exp %196 : vector<2x16xf32>
    %cst_36 = arith.constant 1.000000e+00 : f32
    %198 = vector.broadcast %cst_36 : f32 to vector<2x16xf32>
    %199 = arith.addf %198, %197 : vector<2x16xf32>
    %200 = arith.divf %198, %199 : vector<2x16xf32>
    %201 = vector.extract_strided_slice %186 {offsets = [0, 16], sizes = [2, 16], strides = [1, 1]} : vector<2x64xf32> to vector<2x16xf32>
    %202 = arith.negf %201 : vector<2x16xf32>
    %203 = math.exp %202 : vector<2x16xf32>
    %cst_37 = arith.constant 1.000000e+00 : f32
    %204 = vector.broadcast %cst_37 : f32 to vector<2x16xf32>
    %205 = arith.addf %204, %203 : vector<2x16xf32>
    %206 = arith.divf %204, %205 : vector<2x16xf32>
    %207 = arith.mulf %206, %179 : vector<2x16xf32>
    %208 = arith.mulf %192, %194 : vector<2x16xf32>
    %209 = arith.addf %207, %208 : vector<2x16xf32>
    %210 = math.tanh %209 : vector<2x16xf32>
    %211 = arith.mulf %200, %210 : vector<2x16xf32>
    %212 = vector.extract_strided_slice %5 {offsets = [14, 0], sizes = [2, 64], strides = [1, 1]} : vector<16x64xf32> to vector<2x64xf32>
    %213 = vector.extract_strided_slice %10 {offsets = [0, 0], sizes = [2, 64], strides = [1, 1]} : vector<16x64xf32> to vector<2x64xf32>
    %214 = arith.addf %212, %213 : vector<2x64xf32>
    %cst_38 = arith.constant dense<0.000000e+00> : vector<2x64xf32>
    %215 = tpu.matmul %211, %11, %cst_38 {dimension_numbers = #tpu.dot_dimension_numbers<[1], [0], [0], [1], [0, 0, 1, 1], [], []>} : vector<2x16xf32>, vector<16x64xf32>, vector<2x64xf32> -> vector<2x64xf32>
    %216 = arith.addf %214, %215 : vector<2x64xf32>
    %217 = vector.extract_strided_slice %216 {offsets = [0, 0], sizes = [2, 16], strides = [1, 1]} : vector<2x64xf32> to vector<2x16xf32>
    %218 = arith.negf %217 : vector<2x16xf32>
    %219 = math.exp %218 : vector<2x16xf32>
    %cst_39 = arith.constant 1.000000e+00 : f32
    %220 = vector.broadcast %cst_39 : f32 to vector<2x16xf32>
    %221 = arith.addf %220, %219 : vector<2x16xf32>
    %222 = arith.divf %220, %221 : vector<2x16xf32>
    %223 = vector.extract_strided_slice %216 {offsets = [0, 32], sizes = [2, 16], strides = [1, 1]} : vector<2x64xf32> to vector<2x16xf32>
    %224 = math.tanh %223 : vector<2x16xf32>
    %225 = vector.extract_strided_slice %216 {offsets = [0, 48], sizes = [2, 16], strides = [1, 1]} : vector<2x64xf32> to vector<2x16xf32>
    %226 = arith.negf %225 : vector<2x16xf32>
    %227 = math.exp %226 : vector<2x16xf32>
    %cst_40 = arith.constant 1.000000e+00 : f32
    %228 = vector.broadcast %cst_40 : f32 to vector<2x16xf32>
    %229 = arith.addf %228, %227 : vector<2x16xf32>
    %230 = arith.divf %228, %229 : vector<2x16xf32>
    %231 = vector.extract_strided_slice %216 {offsets = [0, 16], sizes = [2, 16], strides = [1, 1]} : vector<2x64xf32> to vector<2x16xf32>
    %232 = arith.negf %231 : vector<2x16xf32>
    %233 = math.exp %232 : vector<2x16xf32>
    %cst_41 = arith.constant 1.000000e+00 : f32
    %234 = vector.broadcast %cst_41 : f32 to vector<2x16xf32>
    %235 = arith.addf %234, %233 : vector<2x16xf32>
    %236 = arith.divf %234, %235 : vector<2x16xf32>
    %237 = arith.mulf %236, %209 : vector<2x16xf32>
    %238 = arith.mulf %222, %224 : vector<2x16xf32>
    %239 = arith.addf %237, %238 : vector<2x16xf32>
    %240 = math.tanh %239 : vector<2x16xf32>
    %241 = arith.mulf %230, %240 : vector<2x16xf32>
    %242 = tpu.iota {dimensions = array<i32: 1>} : vector<2x16xi32>
    %c8_i32 = arith.constant 8 : i32
    %243 = vector.broadcast %c8_i32 : i32 to vector<2x16xi32>
    %244 = arith.cmpi slt, %242, %243 : vector<2x16xi32>
    %245 = arith.select %244, %31, %241 : vector<2x16xi1>, vector<2x16xf32>
    %246 = arith.select %244, %61, %211 : vector<2x16xi1>, vector<2x16xf32>
    %247 = arith.select %244, %91, %181 : vector<2x16xi1>, vector<2x16xf32>
    %248 = arith.select %244, %121, %151 : vector<2x16xi1>, vector<2x16xf32>
    %249 = arith.select %244, %151, %121 : vector<2x16xi1>, vector<2x16xf32>
    %250 = arith.select %244, %181, %91 : vector<2x16xi1>, vector<2x16xf32>
    %251 = arith.select %244, %211, %61 : vector<2x16xi1>, vector<2x16xf32>
    %252 = arith.select %244, %241, %31 : vector<2x16xi1>, vector<2x16xf32>
    %253 = tpu.concatenate %245, %246, %247, %248, %249, %250, %251, %252 in 0 : vector<2x16xf32>, vector<2x16xf32>, vector<2x16xf32>, vector<2x16xf32>, vector<2x16xf32>, vector<2x16xf32>, vector<2x16xf32>, vector<2x16xf32> -> vector<16x16xf32>
    %c0_42 = arith.constant 0 : index
    %c0_43 = arith.constant 0 : index
    %254 = vector.load %arg6[%c0_42, %c0_43] : memref<16x64xf32, #tpu.memory_space<vmem>>, vector<16x64xf32>
    %cst_44 = arith.constant dense<0.000000e+00> : vector<16x64xf32>
    %255 = tpu.matmul %253, %254, %cst_44 {dimension_numbers = #tpu.dot_dimension_numbers<[1], [0], [0], [1], [0, 0, 1, 1], [], []>} : vector<16x16xf32>, vector<16x64xf32>, vector<16x64xf32> -> vector<16x64xf32>
    %c0_45 = arith.constant 0 : index
    %c0_46 = arith.constant 0 : index
    %256 = vector.load %arg8[%c0_45, %c0_46] : memref<1x64xf32, #tpu.memory_space<vmem>>, vector<1x64xf32>
    %257 = vector.broadcast %256 : vector<1x64xf32> to vector<16x64xf32>
    %258 = arith.addf %255, %257 : vector<16x64xf32>
    %c0_47 = arith.constant 0 : index
    %c0_48 = arith.constant 0 : index
    %259 = vector.load %arg7[%c0_47, %c0_48] : memref<16x64xf32, #tpu.memory_space<vmem>>, vector<16x64xf32>
    %cst_49 = arith.constant dense<0.000000e+00> : vector<16x64xf32>
    %260 = tpu.matmul %253, %259, %cst_49 {dimension_numbers = #tpu.dot_dimension_numbers<[1], [0], [0], [1], [0, 0, 1, 1], [], []>} : vector<16x16xf32>, vector<16x64xf32>, vector<16x64xf32> -> vector<16x64xf32>
    %c0_50 = arith.constant 0 : index
    %c0_51 = arith.constant 0 : index
    %261 = vector.load %arg9[%c0_50, %c0_51] : memref<1x64xf32, #tpu.memory_space<vmem>>, vector<1x64xf32>
    %262 = vector.broadcast %261 : vector<1x64xf32> to vector<16x64xf32>
    %263 = arith.addf %260, %262 : vector<16x64xf32>
    %c0_52 = arith.constant 0 : index
    %c0_53 = arith.constant 0 : index
    %264 = vector.load %arg10[%c0_52, %c0_53] : memref<16x64xf32, #tpu.memory_space<vmem>>, vector<16x64xf32>
    %265 = vector.extract_strided_slice %258 {offsets = [0, 0], sizes = [2, 64], strides = [1, 1]} : vector<16x64xf32> to vector<2x64xf32>
    %266 = vector.extract_strided_slice %263 {offsets = [14, 0], sizes = [2, 64], strides = [1, 1]} : vector<16x64xf32> to vector<2x64xf32>
    %267 = arith.addf %265, %266 : vector<2x64xf32>
    %268 = vector.extract_strided_slice %267 {offsets = [0, 0], sizes = [2, 16], strides = [1, 1]} : vector<2x64xf32> to vector<2x16xf32>
    %269 = arith.negf %268 : vector<2x16xf32>
    %270 = math.exp %269 : vector<2x16xf32>
    %cst_54 = arith.constant 1.000000e+00 : f32
    %271 = vector.broadcast %cst_54 : f32 to vector<2x16xf32>
    %272 = arith.addf %271, %270 : vector<2x16xf32>
    %273 = arith.divf %271, %272 : vector<2x16xf32>
    %274 = vector.extract_strided_slice %267 {offsets = [0, 32], sizes = [2, 16], strides = [1, 1]} : vector<2x64xf32> to vector<2x16xf32>
    %275 = math.tanh %274 : vector<2x16xf32>
    %276 = vector.extract_strided_slice %267 {offsets = [0, 48], sizes = [2, 16], strides = [1, 1]} : vector<2x64xf32> to vector<2x16xf32>
    %277 = arith.negf %276 : vector<2x16xf32>
    %278 = math.exp %277 : vector<2x16xf32>
    %cst_55 = arith.constant 1.000000e+00 : f32
    %279 = vector.broadcast %cst_55 : f32 to vector<2x16xf32>
    %280 = arith.addf %279, %278 : vector<2x16xf32>
    %281 = arith.divf %279, %280 : vector<2x16xf32>
    %282 = arith.mulf %273, %275 : vector<2x16xf32>
    %283 = math.tanh %282 : vector<2x16xf32>
    %284 = arith.mulf %281, %283 : vector<2x16xf32>
    %285 = vector.extract_strided_slice %258 {offsets = [2, 0], sizes = [2, 64], strides = [1, 1]} : vector<16x64xf32> to vector<2x64xf32>
    %286 = vector.extract_strided_slice %263 {offsets = [12, 0], sizes = [2, 64], strides = [1, 1]} : vector<16x64xf32> to vector<2x64xf32>
    %287 = arith.addf %285, %286 : vector<2x64xf32>
    %cst_56 = arith.constant dense<0.000000e+00> : vector<2x64xf32>
    %288 = tpu.matmul %284, %264, %cst_56 {dimension_numbers = #tpu.dot_dimension_numbers<[1], [0], [0], [1], [0, 0, 1, 1], [], []>} : vector<2x16xf32>, vector<16x64xf32>, vector<2x64xf32> -> vector<2x64xf32>
    %289 = arith.addf %287, %288 : vector<2x64xf32>
    %290 = vector.extract_strided_slice %289 {offsets = [0, 0], sizes = [2, 16], strides = [1, 1]} : vector<2x64xf32> to vector<2x16xf32>
    %291 = arith.negf %290 : vector<2x16xf32>
    %292 = math.exp %291 : vector<2x16xf32>
    %cst_57 = arith.constant 1.000000e+00 : f32
    %293 = vector.broadcast %cst_57 : f32 to vector<2x16xf32>
    %294 = arith.addf %293, %292 : vector<2x16xf32>
    %295 = arith.divf %293, %294 : vector<2x16xf32>
    %296 = vector.extract_strided_slice %289 {offsets = [0, 32], sizes = [2, 16], strides = [1, 1]} : vector<2x64xf32> to vector<2x16xf32>
    %297 = math.tanh %296 : vector<2x16xf32>
    %298 = vector.extract_strided_slice %289 {offsets = [0, 48], sizes = [2, 16], strides = [1, 1]} : vector<2x64xf32> to vector<2x16xf32>
    %299 = arith.negf %298 : vector<2x16xf32>
    %300 = math.exp %299 : vector<2x16xf32>
    %cst_58 = arith.constant 1.000000e+00 : f32
    %301 = vector.broadcast %cst_58 : f32 to vector<2x16xf32>
    %302 = arith.addf %301, %300 : vector<2x16xf32>
    %303 = arith.divf %301, %302 : vector<2x16xf32>
    %304 = vector.extract_strided_slice %289 {offsets = [0, 16], sizes = [2, 16], strides = [1, 1]} : vector<2x64xf32> to vector<2x16xf32>
    %305 = arith.negf %304 : vector<2x16xf32>
    %306 = math.exp %305 : vector<2x16xf32>
    %cst_59 = arith.constant 1.000000e+00 : f32
    %307 = vector.broadcast %cst_59 : f32 to vector<2x16xf32>
    %308 = arith.addf %307, %306 : vector<2x16xf32>
    %309 = arith.divf %307, %308 : vector<2x16xf32>
    %310 = arith.mulf %309, %282 : vector<2x16xf32>
    %311 = arith.mulf %295, %297 : vector<2x16xf32>
    %312 = arith.addf %310, %311 : vector<2x16xf32>
    %313 = math.tanh %312 : vector<2x16xf32>
    %314 = arith.mulf %303, %313 : vector<2x16xf32>
    %315 = vector.extract_strided_slice %258 {offsets = [4, 0], sizes = [2, 64], strides = [1, 1]} : vector<16x64xf32> to vector<2x64xf32>
    %316 = vector.extract_strided_slice %263 {offsets = [10, 0], sizes = [2, 64], strides = [1, 1]} : vector<16x64xf32> to vector<2x64xf32>
    %317 = arith.addf %315, %316 : vector<2x64xf32>
    %cst_60 = arith.constant dense<0.000000e+00> : vector<2x64xf32>
    %318 = tpu.matmul %314, %264, %cst_60 {dimension_numbers = #tpu.dot_dimension_numbers<[1], [0], [0], [1], [0, 0, 1, 1], [], []>} : vector<2x16xf32>, vector<16x64xf32>, vector<2x64xf32> -> vector<2x64xf32>
    %319 = arith.addf %317, %318 : vector<2x64xf32>
    %320 = vector.extract_strided_slice %319 {offsets = [0, 0], sizes = [2, 16], strides = [1, 1]} : vector<2x64xf32> to vector<2x16xf32>
    %321 = arith.negf %320 : vector<2x16xf32>
    %322 = math.exp %321 : vector<2x16xf32>
    %cst_61 = arith.constant 1.000000e+00 : f32
    %323 = vector.broadcast %cst_61 : f32 to vector<2x16xf32>
    %324 = arith.addf %323, %322 : vector<2x16xf32>
    %325 = arith.divf %323, %324 : vector<2x16xf32>
    %326 = vector.extract_strided_slice %319 {offsets = [0, 32], sizes = [2, 16], strides = [1, 1]} : vector<2x64xf32> to vector<2x16xf32>
    %327 = math.tanh %326 : vector<2x16xf32>
    %328 = vector.extract_strided_slice %319 {offsets = [0, 48], sizes = [2, 16], strides = [1, 1]} : vector<2x64xf32> to vector<2x16xf32>
    %329 = arith.negf %328 : vector<2x16xf32>
    %330 = math.exp %329 : vector<2x16xf32>
    %cst_62 = arith.constant 1.000000e+00 : f32
    %331 = vector.broadcast %cst_62 : f32 to vector<2x16xf32>
    %332 = arith.addf %331, %330 : vector<2x16xf32>
    %333 = arith.divf %331, %332 : vector<2x16xf32>
    %334 = vector.extract_strided_slice %319 {offsets = [0, 16], sizes = [2, 16], strides = [1, 1]} : vector<2x64xf32> to vector<2x16xf32>
    %335 = arith.negf %334 : vector<2x16xf32>
    %336 = math.exp %335 : vector<2x16xf32>
    %cst_63 = arith.constant 1.000000e+00 : f32
    %337 = vector.broadcast %cst_63 : f32 to vector<2x16xf32>
    %338 = arith.addf %337, %336 : vector<2x16xf32>
    %339 = arith.divf %337, %338 : vector<2x16xf32>
    %340 = arith.mulf %339, %312 : vector<2x16xf32>
    %341 = arith.mulf %325, %327 : vector<2x16xf32>
    %342 = arith.addf %340, %341 : vector<2x16xf32>
    %343 = math.tanh %342 : vector<2x16xf32>
    %344 = arith.mulf %333, %343 : vector<2x16xf32>
    %345 = vector.extract_strided_slice %258 {offsets = [6, 0], sizes = [2, 64], strides = [1, 1]} : vector<16x64xf32> to vector<2x64xf32>
    %346 = vector.extract_strided_slice %263 {offsets = [8, 0], sizes = [2, 64], strides = [1, 1]} : vector<16x64xf32> to vector<2x64xf32>
    %347 = arith.addf %345, %346 : vector<2x64xf32>
    %cst_64 = arith.constant dense<0.000000e+00> : vector<2x64xf32>
    %348 = tpu.matmul %344, %264, %cst_64 {dimension_numbers = #tpu.dot_dimension_numbers<[1], [0], [0], [1], [0, 0, 1, 1], [], []>} : vector<2x16xf32>, vector<16x64xf32>, vector<2x64xf32> -> vector<2x64xf32>
    %349 = arith.addf %347, %348 : vector<2x64xf32>
    %350 = vector.extract_strided_slice %349 {offsets = [0, 0], sizes = [2, 16], strides = [1, 1]} : vector<2x64xf32> to vector<2x16xf32>
    %351 = arith.negf %350 : vector<2x16xf32>
    %352 = math.exp %351 : vector<2x16xf32>
    %cst_65 = arith.constant 1.000000e+00 : f32
    %353 = vector.broadcast %cst_65 : f32 to vector<2x16xf32>
    %354 = arith.addf %353, %352 : vector<2x16xf32>
    %355 = arith.divf %353, %354 : vector<2x16xf32>
    %356 = vector.extract_strided_slice %349 {offsets = [0, 32], sizes = [2, 16], strides = [1, 1]} : vector<2x64xf32> to vector<2x16xf32>
    %357 = math.tanh %356 : vector<2x16xf32>
    %358 = vector.extract_strided_slice %349 {offsets = [0, 48], sizes = [2, 16], strides = [1, 1]} : vector<2x64xf32> to vector<2x16xf32>
    %359 = arith.negf %358 : vector<2x16xf32>
    %360 = math.exp %359 : vector<2x16xf32>
    %cst_66 = arith.constant 1.000000e+00 : f32
    %361 = vector.broadcast %cst_66 : f32 to vector<2x16xf32>
    %362 = arith.addf %361, %360 : vector<2x16xf32>
    %363 = arith.divf %361, %362 : vector<2x16xf32>
    %364 = vector.extract_strided_slice %349 {offsets = [0, 16], sizes = [2, 16], strides = [1, 1]} : vector<2x64xf32> to vector<2x16xf32>
    %365 = arith.negf %364 : vector<2x16xf32>
    %366 = math.exp %365 : vector<2x16xf32>
    %cst_67 = arith.constant 1.000000e+00 : f32
    %367 = vector.broadcast %cst_67 : f32 to vector<2x16xf32>
    %368 = arith.addf %367, %366 : vector<2x16xf32>
    %369 = arith.divf %367, %368 : vector<2x16xf32>
    %370 = arith.mulf %369, %342 : vector<2x16xf32>
    %371 = arith.mulf %355, %357 : vector<2x16xf32>
    %372 = arith.addf %370, %371 : vector<2x16xf32>
    %373 = math.tanh %372 : vector<2x16xf32>
    %374 = arith.mulf %363, %373 : vector<2x16xf32>
    %375 = vector.extract_strided_slice %258 {offsets = [8, 0], sizes = [2, 64], strides = [1, 1]} : vector<16x64xf32> to vector<2x64xf32>
    %376 = vector.extract_strided_slice %263 {offsets = [6, 0], sizes = [2, 64], strides = [1, 1]} : vector<16x64xf32> to vector<2x64xf32>
    %377 = arith.addf %375, %376 : vector<2x64xf32>
    %cst_68 = arith.constant dense<0.000000e+00> : vector<2x64xf32>
    %378 = tpu.matmul %374, %264, %cst_68 {dimension_numbers = #tpu.dot_dimension_numbers<[1], [0], [0], [1], [0, 0, 1, 1], [], []>} : vector<2x16xf32>, vector<16x64xf32>, vector<2x64xf32> -> vector<2x64xf32>
    %379 = arith.addf %377, %378 : vector<2x64xf32>
    %380 = vector.extract_strided_slice %379 {offsets = [0, 0], sizes = [2, 16], strides = [1, 1]} : vector<2x64xf32> to vector<2x16xf32>
    %381 = arith.negf %380 : vector<2x16xf32>
    %382 = math.exp %381 : vector<2x16xf32>
    %cst_69 = arith.constant 1.000000e+00 : f32
    %383 = vector.broadcast %cst_69 : f32 to vector<2x16xf32>
    %384 = arith.addf %383, %382 : vector<2x16xf32>
    %385 = arith.divf %383, %384 : vector<2x16xf32>
    %386 = vector.extract_strided_slice %379 {offsets = [0, 32], sizes = [2, 16], strides = [1, 1]} : vector<2x64xf32> to vector<2x16xf32>
    %387 = math.tanh %386 : vector<2x16xf32>
    %388 = vector.extract_strided_slice %379 {offsets = [0, 48], sizes = [2, 16], strides = [1, 1]} : vector<2x64xf32> to vector<2x16xf32>
    %389 = arith.negf %388 : vector<2x16xf32>
    %390 = math.exp %389 : vector<2x16xf32>
    %cst_70 = arith.constant 1.000000e+00 : f32
    %391 = vector.broadcast %cst_70 : f32 to vector<2x16xf32>
    %392 = arith.addf %391, %390 : vector<2x16xf32>
    %393 = arith.divf %391, %392 : vector<2x16xf32>
    %394 = vector.extract_strided_slice %379 {offsets = [0, 16], sizes = [2, 16], strides = [1, 1]} : vector<2x64xf32> to vector<2x16xf32>
    %395 = arith.negf %394 : vector<2x16xf32>
    %396 = math.exp %395 : vector<2x16xf32>
    %cst_71 = arith.constant 1.000000e+00 : f32
    %397 = vector.broadcast %cst_71 : f32 to vector<2x16xf32>
    %398 = arith.addf %397, %396 : vector<2x16xf32>
    %399 = arith.divf %397, %398 : vector<2x16xf32>
    %400 = arith.mulf %399, %372 : vector<2x16xf32>
    %401 = arith.mulf %385, %387 : vector<2x16xf32>
    %402 = arith.addf %400, %401 : vector<2x16xf32>
    %403 = math.tanh %402 : vector<2x16xf32>
    %404 = arith.mulf %393, %403 : vector<2x16xf32>
    %405 = vector.extract_strided_slice %258 {offsets = [10, 0], sizes = [2, 64], strides = [1, 1]} : vector<16x64xf32> to vector<2x64xf32>
    %406 = vector.extract_strided_slice %263 {offsets = [4, 0], sizes = [2, 64], strides = [1, 1]} : vector<16x64xf32> to vector<2x64xf32>
    %407 = arith.addf %405, %406 : vector<2x64xf32>
    %cst_72 = arith.constant dense<0.000000e+00> : vector<2x64xf32>
    %408 = tpu.matmul %404, %264, %cst_72 {dimension_numbers = #tpu.dot_dimension_numbers<[1], [0], [0], [1], [0, 0, 1, 1], [], []>} : vector<2x16xf32>, vector<16x64xf32>, vector<2x64xf32> -> vector<2x64xf32>
    %409 = arith.addf %407, %408 : vector<2x64xf32>
    %410 = vector.extract_strided_slice %409 {offsets = [0, 0], sizes = [2, 16], strides = [1, 1]} : vector<2x64xf32> to vector<2x16xf32>
    %411 = arith.negf %410 : vector<2x16xf32>
    %412 = math.exp %411 : vector<2x16xf32>
    %cst_73 = arith.constant 1.000000e+00 : f32
    %413 = vector.broadcast %cst_73 : f32 to vector<2x16xf32>
    %414 = arith.addf %413, %412 : vector<2x16xf32>
    %415 = arith.divf %413, %414 : vector<2x16xf32>
    %416 = vector.extract_strided_slice %409 {offsets = [0, 32], sizes = [2, 16], strides = [1, 1]} : vector<2x64xf32> to vector<2x16xf32>
    %417 = math.tanh %416 : vector<2x16xf32>
    %418 = vector.extract_strided_slice %409 {offsets = [0, 48], sizes = [2, 16], strides = [1, 1]} : vector<2x64xf32> to vector<2x16xf32>
    %419 = arith.negf %418 : vector<2x16xf32>
    %420 = math.exp %419 : vector<2x16xf32>
    %cst_74 = arith.constant 1.000000e+00 : f32
    %421 = vector.broadcast %cst_74 : f32 to vector<2x16xf32>
    %422 = arith.addf %421, %420 : vector<2x16xf32>
    %423 = arith.divf %421, %422 : vector<2x16xf32>
    %424 = vector.extract_strided_slice %409 {offsets = [0, 16], sizes = [2, 16], strides = [1, 1]} : vector<2x64xf32> to vector<2x16xf32>
    %425 = arith.negf %424 : vector<2x16xf32>
    %426 = math.exp %425 : vector<2x16xf32>
    %cst_75 = arith.constant 1.000000e+00 : f32
    %427 = vector.broadcast %cst_75 : f32 to vector<2x16xf32>
    %428 = arith.addf %427, %426 : vector<2x16xf32>
    %429 = arith.divf %427, %428 : vector<2x16xf32>
    %430 = arith.mulf %429, %402 : vector<2x16xf32>
    %431 = arith.mulf %415, %417 : vector<2x16xf32>
    %432 = arith.addf %430, %431 : vector<2x16xf32>
    %433 = math.tanh %432 : vector<2x16xf32>
    %434 = arith.mulf %423, %433 : vector<2x16xf32>
    %435 = vector.extract_strided_slice %258 {offsets = [12, 0], sizes = [2, 64], strides = [1, 1]} : vector<16x64xf32> to vector<2x64xf32>
    %436 = vector.extract_strided_slice %263 {offsets = [2, 0], sizes = [2, 64], strides = [1, 1]} : vector<16x64xf32> to vector<2x64xf32>
    %437 = arith.addf %435, %436 : vector<2x64xf32>
    %cst_76 = arith.constant dense<0.000000e+00> : vector<2x64xf32>
    %438 = tpu.matmul %434, %264, %cst_76 {dimension_numbers = #tpu.dot_dimension_numbers<[1], [0], [0], [1], [0, 0, 1, 1], [], []>} : vector<2x16xf32>, vector<16x64xf32>, vector<2x64xf32> -> vector<2x64xf32>
    %439 = arith.addf %437, %438 : vector<2x64xf32>
    %440 = vector.extract_strided_slice %439 {offsets = [0, 0], sizes = [2, 16], strides = [1, 1]} : vector<2x64xf32> to vector<2x16xf32>
    %441 = arith.negf %440 : vector<2x16xf32>
    %442 = math.exp %441 : vector<2x16xf32>
    %cst_77 = arith.constant 1.000000e+00 : f32
    %443 = vector.broadcast %cst_77 : f32 to vector<2x16xf32>
    %444 = arith.addf %443, %442 : vector<2x16xf32>
    %445 = arith.divf %443, %444 : vector<2x16xf32>
    %446 = vector.extract_strided_slice %439 {offsets = [0, 32], sizes = [2, 16], strides = [1, 1]} : vector<2x64xf32> to vector<2x16xf32>
    %447 = math.tanh %446 : vector<2x16xf32>
    %448 = vector.extract_strided_slice %439 {offsets = [0, 48], sizes = [2, 16], strides = [1, 1]} : vector<2x64xf32> to vector<2x16xf32>
    %449 = arith.negf %448 : vector<2x16xf32>
    %450 = math.exp %449 : vector<2x16xf32>
    %cst_78 = arith.constant 1.000000e+00 : f32
    %451 = vector.broadcast %cst_78 : f32 to vector<2x16xf32>
    %452 = arith.addf %451, %450 : vector<2x16xf32>
    %453 = arith.divf %451, %452 : vector<2x16xf32>
    %454 = vector.extract_strided_slice %439 {offsets = [0, 16], sizes = [2, 16], strides = [1, 1]} : vector<2x64xf32> to vector<2x16xf32>
    %455 = arith.negf %454 : vector<2x16xf32>
    %456 = math.exp %455 : vector<2x16xf32>
    %cst_79 = arith.constant 1.000000e+00 : f32
    %457 = vector.broadcast %cst_79 : f32 to vector<2x16xf32>
    %458 = arith.addf %457, %456 : vector<2x16xf32>
    %459 = arith.divf %457, %458 : vector<2x16xf32>
    %460 = arith.mulf %459, %432 : vector<2x16xf32>
    %461 = arith.mulf %445, %447 : vector<2x16xf32>
    %462 = arith.addf %460, %461 : vector<2x16xf32>
    %463 = math.tanh %462 : vector<2x16xf32>
    %464 = arith.mulf %453, %463 : vector<2x16xf32>
    %465 = vector.extract_strided_slice %258 {offsets = [14, 0], sizes = [2, 64], strides = [1, 1]} : vector<16x64xf32> to vector<2x64xf32>
    %466 = vector.extract_strided_slice %263 {offsets = [0, 0], sizes = [2, 64], strides = [1, 1]} : vector<16x64xf32> to vector<2x64xf32>
    %467 = arith.addf %465, %466 : vector<2x64xf32>
    %cst_80 = arith.constant dense<0.000000e+00> : vector<2x64xf32>
    %468 = tpu.matmul %464, %264, %cst_80 {dimension_numbers = #tpu.dot_dimension_numbers<[1], [0], [0], [1], [0, 0, 1, 1], [], []>} : vector<2x16xf32>, vector<16x64xf32>, vector<2x64xf32> -> vector<2x64xf32>
    %469 = arith.addf %467, %468 : vector<2x64xf32>
    %470 = vector.extract_strided_slice %469 {offsets = [0, 0], sizes = [2, 16], strides = [1, 1]} : vector<2x64xf32> to vector<2x16xf32>
    %471 = arith.negf %470 : vector<2x16xf32>
    %472 = math.exp %471 : vector<2x16xf32>
    %cst_81 = arith.constant 1.000000e+00 : f32
    %473 = vector.broadcast %cst_81 : f32 to vector<2x16xf32>
    %474 = arith.addf %473, %472 : vector<2x16xf32>
    %475 = arith.divf %473, %474 : vector<2x16xf32>
    %476 = vector.extract_strided_slice %469 {offsets = [0, 32], sizes = [2, 16], strides = [1, 1]} : vector<2x64xf32> to vector<2x16xf32>
    %477 = math.tanh %476 : vector<2x16xf32>
    %478 = vector.extract_strided_slice %469 {offsets = [0, 48], sizes = [2, 16], strides = [1, 1]} : vector<2x64xf32> to vector<2x16xf32>
    %479 = arith.negf %478 : vector<2x16xf32>
    %480 = math.exp %479 : vector<2x16xf32>
    %cst_82 = arith.constant 1.000000e+00 : f32
    %481 = vector.broadcast %cst_82 : f32 to vector<2x16xf32>
    %482 = arith.addf %481, %480 : vector<2x16xf32>
    %483 = arith.divf %481, %482 : vector<2x16xf32>
    %484 = vector.extract_strided_slice %469 {offsets = [0, 16], sizes = [2, 16], strides = [1, 1]} : vector<2x64xf32> to vector<2x16xf32>
    %485 = arith.negf %484 : vector<2x16xf32>
    %486 = math.exp %485 : vector<2x16xf32>
    %cst_83 = arith.constant 1.000000e+00 : f32
    %487 = vector.broadcast %cst_83 : f32 to vector<2x16xf32>
    %488 = arith.addf %487, %486 : vector<2x16xf32>
    %489 = arith.divf %487, %488 : vector<2x16xf32>
    %490 = arith.mulf %489, %462 : vector<2x16xf32>
    %491 = arith.mulf %475, %477 : vector<2x16xf32>
    %492 = arith.addf %490, %491 : vector<2x16xf32>
    %493 = math.tanh %492 : vector<2x16xf32>
    %494 = arith.mulf %483, %493 : vector<2x16xf32>
    %495 = tpu.iota {dimensions = array<i32: 1>} : vector<2x16xi32>
    %c8_i32_84 = arith.constant 8 : i32
    %496 = vector.broadcast %c8_i32_84 : i32 to vector<2x16xi32>
    %497 = arith.cmpi slt, %495, %496 : vector<2x16xi32>
    %498 = arith.select %497, %284, %494 : vector<2x16xi1>, vector<2x16xf32>
    %499 = arith.select %497, %314, %464 : vector<2x16xi1>, vector<2x16xf32>
    %500 = arith.select %497, %344, %434 : vector<2x16xi1>, vector<2x16xf32>
    %501 = arith.select %497, %374, %404 : vector<2x16xi1>, vector<2x16xf32>
    %502 = arith.select %497, %404, %374 : vector<2x16xi1>, vector<2x16xf32>
    %503 = arith.select %497, %434, %344 : vector<2x16xi1>, vector<2x16xf32>
    %504 = arith.select %497, %464, %314 : vector<2x16xi1>, vector<2x16xf32>
    %505 = arith.select %497, %494, %284 : vector<2x16xi1>, vector<2x16xf32>
    %506 = tpu.concatenate %498, %499, %500, %501, %502, %503, %504, %505 in 1 : vector<2x16xf32>, vector<2x16xf32>, vector<2x16xf32>, vector<2x16xf32>, vector<2x16xf32>, vector<2x16xf32>, vector<2x16xf32>, vector<2x16xf32> -> vector<2x128xf32>
    %c0_85 = arith.constant 0 : index
    %c0_86 = arith.constant 0 : index
    %507 = vector.load %arg11[%c0_85, %c0_86] : memref<128x256xf32, #tpu.memory_space<vmem>>, vector<128x256xf32>
    %c0_87 = arith.constant 0 : index
    %c0_88 = arith.constant 0 : index
    %508 = vector.load %arg12[%c0_87, %c0_88] : memref<1x256xf32, #tpu.memory_space<vmem>>, vector<1x256xf32>
    %cst_89 = arith.constant dense<0.000000e+00> : vector<2x256xf32>
    %509 = tpu.matmul %506, %507, %cst_89 {dimension_numbers = #tpu.dot_dimension_numbers<[1], [0], [0], [1], [0, 0, 1, 1], [], []>} : vector<2x128xf32>, vector<128x256xf32>, vector<2x256xf32> -> vector<2x256xf32>
    %510 = vector.broadcast %508 : vector<1x256xf32> to vector<2x256xf32>
    %511 = arith.addf %509, %510 : vector<2x256xf32>
    %cst_90 = arith.constant 0.000000e+00 : f32
    %512 = vector.broadcast %cst_90 : f32 to vector<2x256xf32>
    %513 = arith.maximumf %511, %512 : vector<2x256xf32>
    %c0_91 = arith.constant 0 : index
    %c0_92 = arith.constant 0 : index
    %514 = vector.load %arg13[%c0_91, %c0_92] : memref<256x128xf32, #tpu.memory_space<vmem>>, vector<256x128xf32>
    %c0_93 = arith.constant 0 : index
    %c0_94 = arith.constant 0 : index
    %515 = vector.load %arg14[%c0_93, %c0_94] : memref<1x128xf32, #tpu.memory_space<vmem>>, vector<1x128xf32>
    %cst_95 = arith.constant dense<0.000000e+00> : vector<2x128xf32>
    %516 = tpu.matmul %513, %514, %cst_95 {dimension_numbers = #tpu.dot_dimension_numbers<[1], [0], [0], [1], [0, 0, 1, 1], [], []>} : vector<2x256xf32>, vector<256x128xf32>, vector<2x128xf32> -> vector<2x128xf32>
    %517 = vector.broadcast %515 : vector<1x128xf32> to vector<2x128xf32>
    %518 = arith.addf %516, %517 : vector<2x128xf32>
    %cst_96 = arith.constant 0.000000e+00 : f32
    %519 = vector.broadcast %cst_96 : f32 to vector<2x128xf32>
    %520 = arith.maximumf %518, %519 : vector<2x128xf32>
    %c0_97 = arith.constant 0 : index
    %c0_98 = arith.constant 0 : index
    %521 = vector.load %arg15[%c0_97, %c0_98] : memref<128x64xf32, #tpu.memory_space<vmem>>, vector<128x64xf32>
    %c0_99 = arith.constant 0 : index
    %c0_100 = arith.constant 0 : index
    %522 = vector.load %arg16[%c0_99, %c0_100] : memref<1x64xf32, #tpu.memory_space<vmem>>, vector<1x64xf32>
    %cst_101 = arith.constant dense<0.000000e+00> : vector<2x64xf32>
    %523 = tpu.matmul %520, %521, %cst_101 {dimension_numbers = #tpu.dot_dimension_numbers<[1], [0], [0], [1], [0, 0, 1, 1], [], []>} : vector<2x128xf32>, vector<128x64xf32>, vector<2x64xf32> -> vector<2x64xf32>
    %524 = vector.broadcast %522 : vector<1x64xf32> to vector<2x64xf32>
    %525 = arith.addf %523, %524 : vector<2x64xf32>
    %cst_102 = arith.constant 0.000000e+00 : f32
    %526 = vector.broadcast %cst_102 : f32 to vector<2x64xf32>
    %527 = arith.maximumf %525, %526 : vector<2x64xf32>
    %c0_103 = arith.constant 0 : index
    %c0_104 = arith.constant 0 : index
    %528 = vector.load %arg17[%c0_103, %c0_104] : memref<64x32xf32, #tpu.memory_space<vmem>>, vector<64x32xf32>
    %c0_105 = arith.constant 0 : index
    %c0_106 = arith.constant 0 : index
    %529 = vector.load %arg18[%c0_105, %c0_106] : memref<1x32xf32, #tpu.memory_space<vmem>>, vector<1x32xf32>
    %cst_107 = arith.constant dense<0.000000e+00> : vector<2x32xf32>
    %530 = tpu.matmul %527, %528, %cst_107 {dimension_numbers = #tpu.dot_dimension_numbers<[1], [0], [0], [1], [0, 0, 1, 1], [], []>} : vector<2x64xf32>, vector<64x32xf32>, vector<2x32xf32> -> vector<2x32xf32>
    %531 = vector.broadcast %529 : vector<1x32xf32> to vector<2x32xf32>
    %532 = arith.addf %530, %531 : vector<2x32xf32>
    %cst_108 = arith.constant 0.000000e+00 : f32
    %533 = vector.broadcast %cst_108 : f32 to vector<2x32xf32>
    %534 = arith.maximumf %532, %533 : vector<2x32xf32>
    %c0_109 = arith.constant 0 : index
    %c0_110 = arith.constant 0 : index
    %535 = vector.load %arg19[%c0_109, %c0_110] : memref<32x16xf32, #tpu.memory_space<vmem>>, vector<32x16xf32>
    %c0_111 = arith.constant 0 : index
    %c0_112 = arith.constant 0 : index
    %536 = vector.load %arg20[%c0_111, %c0_112] : memref<1x16xf32, #tpu.memory_space<vmem>>, vector<1x16xf32>
    %cst_113 = arith.constant dense<0.000000e+00> : vector<2x16xf32>
    %537 = tpu.matmul %534, %535, %cst_113 {dimension_numbers = #tpu.dot_dimension_numbers<[1], [0], [0], [1], [0, 0, 1, 1], [], []>} : vector<2x32xf32>, vector<32x16xf32>, vector<2x16xf32> -> vector<2x16xf32>
    %538 = vector.broadcast %536 : vector<1x16xf32> to vector<2x16xf32>
    %539 = arith.addf %537, %538 : vector<2x16xf32>
    %cst_114 = arith.constant 0.000000e+00 : f32
    %540 = vector.broadcast %cst_114 : f32 to vector<2x16xf32>
    %541 = arith.maximumf %539, %540 : vector<2x16xf32>
    %c0_115 = arith.constant 0 : index
    %c0_116 = arith.constant 0 : index
    %542 = vector.load %arg21[%c0_115, %c0_116] : memref<16x1xf32, #tpu.memory_space<vmem>>, vector<16x1xf32>
    %c0_117 = arith.constant 0 : index
    %c0_118 = arith.constant 0 : index
    %543 = vector.load %arg22[%c0_117, %c0_118] : memref<1x1xf32, #tpu.memory_space<vmem>>, vector<1x1xf32>
    %cst_119 = arith.constant dense<0.000000e+00> : vector<2x1xf32>
    %544 = tpu.matmul %541, %542, %cst_119 {dimension_numbers = #tpu.dot_dimension_numbers<[1], [0], [0], [1], [0, 0, 1, 1], [], []>} : vector<2x16xf32>, vector<16x1xf32>, vector<2x1xf32> -> vector<2x1xf32>
    %545 = vector.broadcast %543 : vector<1x1xf32> to vector<2x1xf32>
    %546 = arith.addf %544, %545 : vector<2x1xf32>
    %c0_120 = arith.constant 0 : index
    %c0_121 = arith.constant 0 : index
    %547 = vector.load %arg23[%c0_120, %c0_121] : memref<2x1xf32, #tpu.memory_space<vmem>>, vector<2x1xf32>
    tpu.vector_store %arg23[%c0_120, %c0_121], %546 {strides = array<i32>} : memref<2x1xf32, #tpu.memory_space<vmem>>, vector<2x1xf32>,
    return
  }
}

</mosaic_0001>

<bundles_post_ra>
// kernel: critic_forward.1
= control target key start
LH: loop header
LB: loop body
LE: loop exit
PB: predicated region body
PF: predicated region fallthrough
CT: control target
= control target key end

     0   :  { %s4299_s0 = inlined_call_operand.vmem [shape: f32[16,4], index: 0, kind: input, shape index: {}]   ;;  %s4300_s1 = inlined_call_operand.vmem [shape: f32[4,64], index: 1, kind: input, shape index: {}]   ;;  %s4301_s2 = inlined_call_operand.hbm [shape: f32[4,64], index: 2, kind: input, shape index: {}]   ;;  %s4302_s3 = inlined_call_operand.vmem [shape: f32[1,64], index: 3, kind: input, shape index: {}]   ;;  %s4303_s4 = inlined_call_operand.hbm [shape: f32[1,64], index: 4, kind: input, shape index: {}]   ;;  %s4304_s5 = inlined_call_operand.vmem [shape: f32[16,64], index: 5, kind: input, shape index: {}]   ;;  %s4305_s6 = inlined_call_operand.vmem [shape: f32[16,64], index: 6, kind: input, shape index: {}]   ;;  %s4306_s7 = inlined_call_operand.vmem [shape: f32[16,64], index: 7, kind: input, shape index: {}]   ;;  %s4307_s8 = inlined_call_operand.hbm [shape: f32[1,64], index: 8, kind: input, shape index: {}]   ;;  %s4308_s9 = inlined_call_operand.hbm [shape: f32[1,64], index: 9, kind: input, shape index: {}]   ;;  %s4309_s10 = inlined_call_operand.vmem [shape: f32[16,64], index: 10, kind: input, shape index: {}]   ;;  %s4310_s11 = inlined_call_operand.vmem [shape: f32[128,256], index: 11, kind: input, shape index: {}]   ;;  %s4311_s12 = inlined_call_operand.vmem [shape: f32[1,256], index: 12, kind: input, shape index: {}]   ;;  %s4312_s13 = inlined_call_operand.hbm [shape: f32[256,128], index: 13, kind: input, shape index: {}]   ;;  %s4313_s14 = inlined_call_operand.vmem [shape: f32[1,128], index: 14, kind: input, shape index: {}]   ;;  %s4314_s15 = inlined_call_operand.vmem [shape: f32[128,64], index: 15, kind: input, shape index: {}]   ;;  %s4315_s16 = inlined_call_operand.vmem [shape: f32[1,64], index: 16, kind: input, shape index: {}]   ;;  %s4316_s17 = inlined_call_operand.vmem [shape: f32[64,32], index: 17, kind: input, shape index: {}]   ;;  %s4317_s18 = inlined_call_operand.vmem [shape: f32[1,32], index: 18, kind: input, shape index: {}]   ;;  %s4318_s19 = inlined_call_operand.vmem [shape: f32[32,16], index: 19, kind: input, shape index: {}]   ;;  %s4319_s20 = inlined_call_operand.vmem [shape: f32[1,16], index: 20, kind: input, shape index: {}]   ;;  %s4320_s21 = inlined_call_operand.vmem [shape: f32[16,1], index: 21, kind: input, shape index: {}]   ;;  %s4321_s22 = inlined_call_operand.<no memory space> [shape: f32[1,1], index: 22, kind: input, shape index: {}]   ;;  %s4322_s23 = inlined_call_operand.vmem [shape: f32[2,1], index: 23, kind: output, shape index: {}]  }
   0x1   :  { %4329 = sst [smem:[#allocation14_spill]] %s4299_s0  ;;  %v28_v0 = vstv %s4321_s22 }
   0x2   :  { %4330 = sst [smem:[#allocation15_spill]] %s4300_s1  ;;  %29 = vst [vmem:[#allocation2] sm:$0x1] %v28_v0 }
   0x3   :  { %4331 = sst [smem:[#allocation16_spill]] %s4301_s2 }
   0x4   :  { %4332 = sst [smem:[#allocation17_spill]] %s4302_s3 }
   0x5   :  { %4333 = sst [smem:[#allocation18_spill]] %s4303_s4 }
   0x6   :  { %4334 = sst [smem:[#allocation19_spill]] %s4304_s5 }
   0x7   :  { %4335 = sst [smem:[#allocation20_spill]] %s4305_s6 }
   0x8   :  { %4336 = sst [smem:[#allocation21_spill]] %s4306_s7 }
   0x9   :  { %30 = vsyncpa [#allocation4], 0 }
   0xa   :  { %31 = vsyncpa [#allocation6], 0 }
   0xb   :  { %32 = vsyncpa [#allocation9], 0  ;;  %s3540_s24 = smov [#allocation5]   ;;  %s3541_s5 = smov [#allocation8]  }
   0xc   :  { %s55_s25 = sshll.u32 %s3540_s24, 4  ;;  %s81_s1 = sshll.u32 %s3541_s5, 4  ;;  %s56_s25 = int_to_ptr.vmem [resolvable:$true] %s55_s25  ;;  %s82_s1 = int_to_ptr.vmem [resolvable:$true] %s81_s1 }
   0xd   :  { %s4337_s6 = sld [smem:[#allocation18_spill]] }
  0x13   :  { %s3424_s27 = scalar_lea.hbm %s4337_s6, 16 }
  0x14   :  { %p3425_p0 = scmp.ne.s32.totalorder %s4337_s6, %s3424_s27  ;;  %p3428_p1 = scmp.lt.u32.totalorder %s3424_s27, %s4337_s6 }
  0x16   :  { %p3430_p2 = pnand %p3428_p1, %p3425_p0 }
  0x18   :  { %3433 = shalt.err (!%p3430_p2)
}
  0x19   :  { %s3434_s3 = scalar_lea.vmem %s56_s25, 16  ;;  %s3438_s0 = scalar_lea.vmem %s56_s25, 32 }
  0x1a   :  { %p3435_p3 = scmp.ne.s32.totalorder %s56_s25, %s3434_s3  ;;  %p3439_p4 = scmp.lt.s32.totalorder %s56_s25, %s56_s25 }
  0x1b   :  { %p3440_p5 = scmp.lt.s32.totalorder %s3438_s0, %s3434_s3 }
  0x1d   :  { %p3441_p6 = por %p3440_p5, %p3439_p4 }
  0x1f   :  { %p3442_p7 = pnand %p3441_p6, %p3435_p3 }
  0x21   :  { %3445 = shalt.err (!%p3442_p7)
}
  0x22   :  { %58 = dma.hbm_to_vmem [thread:$0]  %s4337_s6, 16, %s56_s25, [#allocation6]  }
  0x23   :  { %s3446_s26 = scalar_lea.hbm %s4308_s9, 16 }
  0x24   :  { %p3447_p8 = scmp.ne.s32.totalorder %s4308_s9, %s3446_s26  ;;  %p3450_p9 = scmp.lt.u32.totalorder %s3446_s26, %s4308_s9 }
  0x26   :  { %p3452_p10 = pnand %p3450_p9, %p3447_p8 }
  0x28   :  { %3455 = shalt.err (!%p3452_p10)
}
  0x29   :  { %s3456_s29 = scalar_lea.vmem %s82_s1, 16  ;;  %s3460_s22 = scalar_lea.vmem %s82_s1, 32 }
  0x2a   :  { %p3457_p11 = scmp.ne.s32.totalorder %s82_s1, %s3456_s29  ;;  %p3461_p12 = scmp.lt.s32.totalorder %s82_s1, %s82_s1 }
  0x2b   :  { %p3462_p13 = scmp.lt.s32.totalorder %s3460_s22, %s3456_s29 }
  0x2d   :  { %p3463_p0 = por %p3462_p13, %p3461_p12 }
  0x2f   :  { %p3464_p1 = pnand %p3463_p0, %p3457_p11 }
  0x31   :  { %3467 = shalt.err (!%p3464_p1)
}
  0x32   :  { %84 = dma.hbm_to_vmem [thread:$0]  %s4308_s9, 16, %s82_s1, [#allocation9]  }
  0x33   :  { %s3542_s3 = smov [#allocation3]   ;;  %s3543_s4 = smov [#allocation7]  }
  0x34   :  { %s43_s0 = sshll.u32 %s3542_s3, 4  ;;  %s71_s30 = sshll.u32 %s3543_s4, 4  ;;  %s44_s0 = int_to_ptr.vmem [resolvable:$true] %s43_s0  ;;  %s72_s30 = int_to_ptr.vmem [resolvable:$true] %s71_s30 }
  0x35   :  { %s4338_s26 = sld [smem:[#allocation16_spill]] }
  0x3b   :  { %s3468_s2 = scalar_lea.hbm %s4338_s26, 64 }
  0x3c   :  { %p3469_p2 = scmp.ne.s32.totalorder %s4338_s26, %s3468_s2  ;;  %p3472_p3 = scmp.lt.u32.totalorder %s3468_s2, %s4338_s26 }
  0x3e   :  { %p3474_p4 = pnand %p3472_p3, %p3469_p2 }
  0x40   :  { %3477 = shalt.err (!%p3474_p4)
}
  0x41   :  { %s3478_s9 = scalar_lea.vmem %s44_s0, 64  ;;  %p3483_p6 = scmp.lt.s32.totalorder %s44_s0, %s44_s0 }
  0x42   :  { %p3479_p5 = scmp.ne.s32.totalorder %s44_s0, %s3478_s9  ;;  %p3484_p7 = scmp.lt.s32.totalorder %s3478_s9, %s3478_s9 }
  0x44   :  { %p3485_p8 = por %p3484_p7, %p3483_p6 }
  0x46   :  { %p3486_p9 = pnand %p3485_p8, %p3479_p5 }
  0x48   :  { %3489 = shalt.err (!%p3486_p9)
}
  0x49   :  { %46 = dma.hbm_to_vmem [thread:$0]  %s4338_s26, 64, %s44_s0, [#allocation4]  }
  0x4a   :  { %s3490_s3 = scalar_lea.hbm %s4307_s8, 16 }
  0x4b   :  { %p3491_p10 = scmp.ne.s32.totalorder %s4307_s8, %s3490_s3  ;;  %p3494_p11 = scmp.lt.u32.totalorder %s3490_s3, %s4307_s8 }
  0x4d   :  { %p3496_p12 = pnand %p3494_p11, %p3491_p10 }
  0x4f   :  { %3499 = shalt.err (!%p3496_p12)
}
  0x50   :  { %s3500_s27 = scalar_lea.vmem %s72_s30, 16  ;;  %s3504_s7 = scalar_lea.vmem %s72_s30, 32 }
  0x51   :  { %p3501_p13 = scmp.ne.s32.totalorder %s72_s30, %s3500_s27  ;;  %p3505_p0 = scmp.lt.s32.totalorder %s72_s30, %s72_s30 }
  0x52   :  { %p3506_p1 = scmp.lt.s32.totalorder %s3504_s7, %s3500_s27 }
  0x54   :  { %p3507_p2 = por %p3506_p1, %p3505_p0 }
  0x56   :  { %p3508_p3 = pnand %p3507_p2, %p3501_p13 }
  0x58   :  { %3511 = shalt.err (!%p3508_p3)
}
  0x59   :  { %74 = dma.hbm_to_vmem [thread:$0]  %s4307_s8, 16, %s72_s30, [#allocation6]  }
  0x5a   :  { %s3544_s28 = smov [#allocation10]   ;;  %s3512_s22 = scalar_lea.hbm %s4312_s13, 4096 }
  0x5b   :  { %s96_s29 = sshll.u32 %s3544_s28, 4  ;;  %p3513_p4 = scmp.ne.s32.totalorder %s4312_s13, %s3512_s22  ;;  %s97_s29 = int_to_ptr.vmem [resolvable:$true] %s96_s29 }
  0x5c   :  { %p3516_p5 = scmp.lt.u32.totalorder %s3512_s22, %s4312_s13 }
  0x5e   :  { %p3518_p6 = pnand %p3516_p5, %p3513_p4 }
  0x60   :  { %3521 = shalt.err (!%p3518_p6)
}
  0x61   :  { %s3522_s24 = scalar_lea.vmem %s97_s29, 4096  ;;  %p3527_p8 = scmp.lt.s32.totalorder %s97_s29, %s97_s29 }
  0x62   :  { %p3523_p7 = scmp.ne.s32.totalorder %s97_s29, %s3522_s24  ;;  %p3528_p9 = scmp.lt.s32.totalorder %s3522_s24, %s3522_s24 }
  0x64   :  { %p3529_p10 = por %p3528_p9, %p3527_p8 }
  0x66   :  { %p3530_p11 = pnand %p3529_p10, %p3523_p7 }
  0x68   :  { %3533 = shalt.err (!%p3530_p11)
}
  0x69   :  { %s3545_s8 = smov 128   ;;  %s3546_s30 = smov 8  }
  0x6a   :  { %102 = dma.hbm_to_vmem [thread:$0]  %s4312_s13, 4096, %s97_s29, [#allocation9], %s3545_s8, %s3545_s8, %s3546_s30  }
  0x6b   :  { %3534 = dma.done.wait [#allocation4], 64  }
  0x6c   :  { %3535 = vsyncadd [#allocation4], 4294967232 }
  0x6d   :  { %3536 = dma.done.wait [#allocation6], 32  }
  0x6e   :  { %3537 = vsyncadd [#allocation6], 4294967264 }
  0x6f   :  { %3538 = dma.done.wait [#allocation9], 4112  }
  0x70   :  { %3539 = vsyncadd [#allocation9], 4294963184  ;;  %vm153_vm0 = vcmask 1043456   ;;  %vm146_vm1 = vcmask 31744   ;;  %s4339_s0 = sld [smem:[#allocation15_spill]]  ;;  %s4340_s9 = sld [smem:[#allocation14_spill]] }
  0x71   :  { %v232_v2 = vld [vmem:[#allocation3] sm:$0xf]  ;;  %s4341_s25 = sld [smem:[#allocation17_spill]]  ;;  %v2753_v6 = vld [vmem:[#allocation5] ss:$0 sm:$0xff]  ;;  %s3547_s6 = smov 96  }
  0x72   :  { %2931 = vmatprep.subr.msk.mxu1 %vm153_vm0, %v232_v2  ;;  %s4342_s24 = sld [smem:[#allocation19_spill]]  ;;  %v3548_v32 = vmov 0.0|0.0   ;;  %vm3549_vm2 = vmmov 0   ;;  %v3550_v34 = vmov 0.0   ;;  %s3551_s5 = smov 48   ;;  %vm348_vm3 = vcmask 130048  }
  0x73   :  { %2932 = vmatpush3.msk.msra.mxu1 %vm153_vm0, %v232_v2  ;;  %s3552_s2 = smov 16   ;;  %s3553_s27 = smov 80   ;;  %vm1140_vm5 = vcmask 1041408   ;;  %vm1143_vm6 = vcmask 1045504   ;;  %vm2151_vm7 = vcmask 261120   ;;  %vm2153_vm8 = vcmask 392192  }
  0x74   :  { %3123 = vmatprep.subr.bf16.mxu1 %v3548_v32  ;;  %s3554_s7 = smov 32   ;;  %s4343_s28 = sld [smem:[#allocation21_spill]]  ;;  %vm2155_vm9 = vcmask 523264   ;;  %vm2157_vm10 = vcmask 654336   ;;  %vm2159_vm11 = vcmask 785408   ;;  %vm2161_vm12 = vcmask 916480  }
  0x75   :  { %s4344_s22 = sld [smem:[#allocation20_spill]]  ;;  %vm2740_vm13 = vcmask 1024  }
  0x76   :  { %v138_v1 = vld [vmem:[%s4339_s0] sm:$0xf]  ;;  %v137_v4 = vld [vmem:[%s4340_s9 + $0x8] sm:$0xff] }
  0x77   :  { %v136_v3 = vld [vmem:[%s4340_s9] sm:$0xff]  ;;  %2926 = vmatprep.subr.msk.mxu0 %vm153_vm0, %v138_v1 }
  0x78   :  { %2927 = vmatpush3.msk.msra.mxu0 %vm153_vm0, %v138_v1  ;;  %2928 = vmatprep.mubr.msk.f32.mxu0 %vm146_vm1, %v136_v3  ;;  %v2749_v5 = vld [vmem:[%s4341_s25] ss:$0 sm:$0xff]  ;;  %v319_v31 = vld [vmem:[%s4342_s24 + $0x8] sm:$0xff] }
  0x79   :  { %2933 = vmatprep.mubr.msk.f32.mxu1 %vm146_vm1, %v136_v3  ;;  %2929 = vmatmul.mubr.msk.f32.vlgmr.msra.gmra.mrb[0].mxu0 %vm146_vm1, %v137_v4  ;;  %v318_v30 = vld [vmem:[%s4342_s24] sm:$0xff] }
  0x7a   :  { %2934 = vmatmul.mubr.msk.f32.vlgmr.msra.gmra.mrb[0].mxu1 %vm146_vm1, %v137_v4  ;;  %3120 = vmatprep.subr.bf16.mxu0 %v3548_v32  ;;  %v3774_v33 = vpack.c.bf16 %v319_v31, %v318_v30 }
  0x7b   :  { %2940 = vmatprep.mubr.msk.f32.mxu0 %vm3549_vm2, %v3550_v34  ;;  %2947 = vmatprep.mubr.msk.f32.mxu1 %vm3549_vm2, %v3550_v34 }
  0x7c   :  { %3122 = vmatpush3.bf16.msra.mxu0 %v3774_v33  ;;  %3125 = vmatpush3.bf16.msra.mxu1 %v3774_v33 }
  0x7d   :  { %3126 = vmatprep.subr.bf16.mxu0 %v3548_v32  ;;  %3129 = vmatprep.subr.bf16.mxu1 %v3548_v32 }
 0x14c   :  { %v2930_v7 = vpop.f32.mrb[0].mxu0 }
 0x14d   :  { %v2935_v8 = vpop.f32.mrb[0].mxu1  ;;  %v229_v9 = vadd.f32 %v2930_v7, %v2749_v5  ;;  %v223_v11 = vpop.f32.mrb[1].mxu0 }
 0x14e   :  { %v315_v10 = vadd.f32 %v2935_v8, %v2753_v6  ;;  %v309_v12 = vpop.f32.mrb[1].mxu1  ;;  %v224_v13 = vadd.f32 %v2749_v5, %v223_v11 }
 0x14f   :  { %v310_v14 = vadd.f32 %v2753_v6, %v309_v12 }
 0x150   :  { %v321_v15 = vrot.slane %v315_v10, 6  ;;  %v342_v16 = vrot.slane %v315_v10, 2 }
 0x151   :  { %v669_v17 = vrot.slane %v310_v14, 6  ;;  %v776_v18 = vrot.slane %v310_v14, 2 }
 0x152   :  { %v3756_v19 = vadd.f32 %v321_v15, %v224_v13  ;;  %v3758_v20 = vadd.f32 %v342_v16, %v224_v13 }
 0x153   :  { %v3760_v21 = vadd.f32 %v669_v17, %v229_v9  ;;  %v3762_v22 = vadd.f32 %v776_v18, %v229_v9 }
 0x154   :  { %3296 = vtanh.f32 %v3756_v19  ;;  %v2757_v24 = vmul.f32 -1.442695, %v3756_v19 }
 0x156   :  { %3298 = vpow2.f32 %v2757_v24 }
 0x15e   :  { %v3297_v23 = vpop.eup %3296 }
 0x15f   :  { %332 = vrot.lane.b32.xlu0 %v3297_v23, %s3547_s6 }
 0x160   :  { %v3299_v25 = vpop.eup %3298 }
 0x161   :  { %v327_v26 = vadd.f32 1.0, %v3299_v25 }
 0x163   :  { %3300 = vrcp.f32 %v327_v26 }
 0x16d   :  { %v3301_v27 = vpop.eup %3300 }
 0x1d1   :  { %v333_v28 = vpop.permute.xlu0 %332 }
 0x1d2   :  { %v335_v29 = vmul.f32 %v3301_v27, %v333_v28 }
 0x1d4   :  { %3302 = vtanh.f32 %v335_v29  ;;  %v433_v36 = vrot.slane %v335_v29, 6 }
 0x1de   :  { %v3303_v35 = vpop.eup %3302 }
 0x1df   :  { %338 = vrot.lane.b32.xlu0 %v3303_v35, %s3551_s5 }
 0x1e3   :  { %434 = vrot.lane.b32.xlu0 %v433_v36, %s3552_s2 }
 0x251   :  { %v339_v37 = vpop.permute.xlu0 %338 }
 0x252   :  { %v341_v38 = vmul.f32 %v3301_v27, %v339_v37 }
 0x254   :  { %346 = vrot.lane.b32.xlu1 %v341_v38, %s3553_s27 }
 0x255   :  { %v435_v51 = vpop.permute.xlu0 %434 }
 0x2c6   :  { %v3788_v39 = vpop.permute.xlu1 %346 }
 0x2c7   :  { %2941 = vmatmul.mubr.msk.f32.vlgmr.msra.gmra.mrb[2].mxu0 %vm348_vm3, %v3788_v39 }
 0x2c8   :  { %3128 = vmatpush3.bf16.msra.mxu0 %v3774_v33  ;;  %2954 = vmatprep.mubr.msk.f32.mxu0 %vm3549_vm2, %v3550_v34 }
 0x2c9   :  { %3132 = vmatprep.subr.bf16.mxu0 %v3548_v32 }
 0x39a   :  { %v417_v40 = vpop.f32.mrb[2].mxu0 }
 0x39b   :  { %v422_v41 = vrot.slane %v417_v40, 6  ;;  %v2942_v42 = vpop.f32.mrb[3].mxu0 }
 0x39d   :  { %v424_v43 = vadd.f32 %v422_v41, %v3758_v20 }
 0x39f   :  { %3304 = vtanh.f32 %v424_v43  ;;  %v2759_v45 = vmul.f32 -1.442695, %v424_v43 }
 0x3a1   :  { %3306 = vpow2.f32 %v2759_v45 }
 0x3a9   :  { %v3305_v44 = vpop.eup %3304 }
 0x3aa   :  { %439 = vrot.lane.b32.xlu1 %v3305_v44, %s3547_s6 }
 0x3ab   :  { %v3307_v46 = vpop.eup %3306 }
 0x3ac   :  { %v428_v47 = vadd.f32 1.0, %v3307_v46 }
 0x3ae   :  { %3308 = vrcp.f32 %v428_v47 }
 0x3b8   :  { %v3309_v48 = vpop.eup %3308 }
 0x3b9   :  { %v437_v52 = vmul.f32 %v3309_v48, %v435_v51 }
 0x41c   :  { %v440_v49 = vpop.permute.xlu1 %439 }
 0x41d   :  { %v442_v50 = vmul.f32 %v3309_v48, %v440_v49 }
 0x41f   :  { %444 = vrot.lane.b32.xlu1 %v442_v50, %s3552_s2 }
 0x491   :  { %v445_v53 = vpop.permute.xlu1 %444 }
 0x492   :  { %v447_v54 = vadd.f32 %v445_v53, %v437_v52 }
 0x494   :  { %3310 = vtanh.f32 %v447_v54  ;;  %v542_v7 = vrot.slane %v447_v54, 6 }
 0x49e   :  { %v3311_v55 = vpop.eup %3310 }
 0x49f   :  { %450 = vrot.lane.b32.xlu0 %v3311_v55, %s3554_s7 }
 0x511   :  { %v451_v56 = vpop.permute.xlu0 %450 }
 0x512   :  { %v453_v57 = vmul.f32 %v3309_v48, %v451_v56 }
 0x514   :  { %v455_v58 = vrot.slane %v453_v57, 2 }
 0x516   :  { %456 = vrot.lane.b32.xlu1 %v455_v58, %s3553_s27 }
 0x588   :  { %v3801_v59 = vpop.permute.xlu1 %456 }
 0x589   :  { %2948 = vmatmul.mubr.msk.f32.vlgmr.msra.gmra.mrb[2].mxu1 %vm348_vm3, %v3801_v59 }
 0x58a   :  { %3131 = vmatpush3.bf16.msra.mxu1 %v3774_v33  ;;  %2961 = vmatprep.mubr.msk.f32.mxu1 %vm3549_vm2, %v3550_v34 }
 0x58b   :  { %3135 = vmatprep.subr.bf16.mxu1 %v3548_v32 }
 0x65c   :  { %v526_v60 = vpop.f32.mrb[2].mxu1 }
 0x65d   :  { %v531_v61 = vrot.slane %v526_v60, 4  ;;  %v2949_v62 = vpop.f32.mrb[3].mxu1 }
 0x65f   :  { %v533_v63 = vadd.f32 %v531_v61, %v3756_v19 }
 0x661   :  { %3312 = vtanh.f32 %v533_v63  ;;  %v2761_v1 = vmul.f32 -1.442695, %v533_v63 }
 0x663   :  { %3314 = vpow2.f32 %v2761_v1 }
 0x66b   :  { %v3313_v0 = vpop.eup %3312 }
 0x66c   :  { %546 = vrot.lane.b32.xlu0 %v3313_v0, %s3547_s6 }
 0x66d   :  { %v3315_v2 = vpop.eup %3314 }
 0x66e   :  { %v537_v3 = vadd.f32 1.0, %v3315_v2 }
 0x670   :  { %3316 = vrcp.f32 %v537_v3 }
 0x67a   :  { %v3317_v4 = vpop.eup %3316 }
 0x67b   :  { %v544_v8 = vmul.f32 %v3317_v4, %v542_v7 }
 0x6de   :  { %v547_v5 = vpop.permute.xlu0 %546 }
 0x6df   :  { %v549_v6 = vmul.f32 %v3317_v4, %v547_v5 }
 0x6e1   :  { %551 = vrot.lane.b32.xlu1 %v549_v6, %s3552_s2 }
 0x753   :  { %v552_v9 = vpop.permute.xlu1 %551 }
 0x754   :  { %v554_v10 = vadd.f32 %v552_v9, %v544_v8 }
 0x756   :  { %3318 = vtanh.f32 %v554_v10  ;;  %v649_v30 = vrot.slane %v554_v10, 6 }
 0x760   :  { %v3319_v11 = vpop.eup %3318 }
 0x761   :  { %557 = vrot.lane.b32.xlu0 %v3319_v11, %s3554_s7 }
 0x7d3   :  { %v558_v12 = vpop.permute.xlu0 %557 }
 0x7d4   :  { %v560_v13 = vmul.f32 %v3317_v4, %v558_v12 }
 0x7d6   :  { %v562_v14 = vrot.slane %v560_v13, 4 }
 0x7d8   :  { %563 = vrot.lane.b32.xlu1 %v562_v14, %s3553_s27 }
 0x84a   :  { %v3814_v15 = vpop.permute.xlu1 %563 }
 0x84b   :  { %2955 = vmatmul.mubr.msk.f32.vlgmr.msra.gmra.mrb[4].mxu0 %vm348_vm3, %v3814_v15 }
 0x84c   :  { %3134 = vmatpush3.bf16.msra.mxu0 %v3774_v33  ;;  %2968 = vmatprep.mubr.msk.f32.mxu0 %vm3549_vm2, %v3550_v34 }
 0x84d   :  { %3138 = vmatprep.subr.bf16.mxu0 %v3548_v32 }
 0x91e   :  { %v633_v16 = vpop.f32.mrb[4].mxu0 }
 0x91f   :  { %v638_v17 = vrot.slane %v633_v16, 2  ;;  %v2956_v18 = vpop.f32.mrb[5].mxu0 }
 0x921   :  { %v640_v19 = vadd.f32 %v638_v17, %v3758_v20 }
 0x923   :  { %3320 = vtanh.f32 %v640_v19  ;;  %v2763_v24 = vmul.f32 -1.442695, %v640_v19 }
 0x925   :  { %3322 = vpow2.f32 %v2763_v24 }
 0x92d   :  { %v3321_v23 = vpop.eup %3320 }
 0x92e   :  { %653 = vrot.lane.b32.xlu0 %v3321_v23, %s3547_s6 }
 0x92f   :  { %v3323_v25 = vpop.eup %3322 }
 0x930   :  { %v644_v26 = vadd.f32 1.0, %v3323_v25 }
 0x932   :  { %3324 = vrcp.f32 %v644_v26 }
 0x93c   :  { %v3325_v27 = vpop.eup %3324 }
 0x93d   :  { %v651_v31 = vmul.f32 %v3325_v27, %v649_v30 }
 0x9a0   :  { %v654_v28 = vpop.permute.xlu0 %653 }
 0x9a1   :  { %v656_v29 = vmul.f32 %v3325_v27, %v654_v28 }
 0x9a3   :  { %658 = vrot.lane.b32.xlu1 %v656_v29, %s3552_s2 }
 0xa15   :  { %v659_v35 = vpop.permute.xlu1 %658 }
 0xa16   :  { %v661_v36 = vadd.f32 %v659_v35, %v651_v31 }
 0xa18   :  { %3326 = vtanh.f32 %v661_v36  ;;  %v757_v52 = vrot.slane %v661_v36, 6 }
 0xa22   :  { %v3327_v20 = vpop.eup %3326 }
 0xa23   :  { %664 = vrot.lane.b32.xlu0 %v3327_v20, %s3554_s7 }
 0xa95   :  { %v665_v37 = vpop.permute.xlu0 %664 }
 0xa96   :  { %v667_v38 = vmul.f32 %v3325_v27, %v665_v37 }
 0xa98   :  { %v673_v40 = vrot.slane %v667_v38, 6 }
 0xa9a   :  { %674 = vrot.lane.b32.xlu1 %v673_v40, %s3553_s27 }
 0xb0c   :  { %v3827_v41 = vpop.permute.xlu1 %674 }
 0xb0d   :  { %2962 = vmatmul.mubr.msk.f32.vlgmr.msra.gmra.mrb[4].mxu1 %vm348_vm3, %v3827_v41 }
 0xb0e   :  { %3137 = vmatpush3.bf16.msra.mxu1 %v3774_v33  ;;  %2975 = vmatprep.mubr.msk.f32.mxu1 %vm3549_vm2, %v3550_v34 }
 0xbe0   :  { %v744_v42 = vpop.f32.mrb[4].mxu1 }
 0xbe1   :  { %v748_v43 = vadd.f32 %v744_v42, %v3760_v21  ;;  %v2963_v44 = vpop.f32.mrb[5].mxu1 }
 0xbe3   :  { %3328 = vtanh.f32 %v748_v43  ;;  %v2765_v46 = vmul.f32 -1.442695, %v748_v43 }
 0xbe5   :  { %3330 = vpow2.f32 %v2765_v46 }
 0xbed   :  { %v3329_v45 = vpop.eup %3328 }
 0xbee   :  { %761 = vrot.lane.b32.xlu0 %v3329_v45, %s3547_s6 }
 0xbef   :  { %v3331_v47 = vpop.eup %3330 }
 0xbf0   :  { %v752_v48 = vadd.f32 1.0, %v3331_v47 }
 0xbf2   :  { %3332 = vrcp.f32 %v752_v48 }
 0xbfc   :  { %v3333_v49 = vpop.eup %3332 }
 0xbfd   :  { %v759_v53 = vmul.f32 %v3333_v49, %v757_v52 }
 0xc60   :  { %v762_v50 = vpop.permute.xlu0 %761 }
 0xc61   :  { %v764_v51 = vmul.f32 %v3333_v49, %v762_v50 }
 0xc63   :  { %766 = vrot.lane.b32.xlu1 %v764_v51, %s3552_s2 }
 0xcd5   :  { %v767_v54 = vpop.permute.xlu1 %766 }
 0xcd6   :  { %v769_v55 = vadd.f32 %v767_v54, %v759_v53 }
 0xcd8   :  { %3334 = vtanh.f32 %v769_v55  ;;  %v866_v7 = vrot.slane %v769_v55, 6 }
 0xce2   :  { %v3335_v56 = vpop.eup %3334 }
 0xce3   :  { %772 = vrot.lane.b32.xlu0 %v3335_v56, %s3554_s7 }
 0xd55   :  { %v773_v57 = vpop.permute.xlu0 %772 }
 0xd56   :  { %v775_v58 = vmul.f32 %v3333_v49, %v773_v57 }
 0xd58   :  { %780 = vrot.lane.b32.xlu1 %v775_v58, %s3553_s27  ;;  %v1238_v58 = vld [vmem:[%s4343_s28] sm:$0xff] }
 0xdca   :  { %v3839_v60 = vpop.permute.xlu1 %780 }
 0xdcb   :  { %2969 = vmatmul.mubr.msk.f32.vlgmr.msra.gmra.mrb[6].mxu0 %vm348_vm3, %v3839_v60 }
 0xdcc   :  { %3140 = vmatpush3.bf16.msra.mxu0 %v3774_v33  ;;  %2982 = vmatprep.mubr.msk.f32.mxu0 %vm3549_vm2, %v3550_v34 }
 0xe9e   :  { %v850_v61 = vpop.f32.mrb[6].mxu0 }
 0xe9f   :  { %v855_v62 = vrot.slane %v850_v61, 6  ;;  %v2970_v63 = vpop.f32.mrb[7].mxu0  ;;  %v1239_v61 = vld [vmem:[%s4343_s28 + $0x8] sm:$0xff] }
 0xea0   :  { %v3145_v63 = vpack.c.bf16 %v1239_v61, %v1238_v58 }
 0xea1   :  { %v857_v0 = vadd.f32 %v855_v62, %v3762_v22  ;;  %v1148_v62 = vld [vmem:[%s4344_s22] sm:$0xff] }
 0xea2   :  { %3146 = vmatprep.subr.bf16.mxu0 %v3145_v63 }
 0xea3   :  { %3336 = vtanh.f32 %v857_v0  ;;  %v2767_v2 = vmul.f32 -1.442695, %v857_v0  ;;  %v1149_v0 = vld [vmem:[%s4344_s22 + $0x8] sm:$0xff] }
 0xea5   :  { %3338 = vpow2.f32 %v2767_v2 }
 0xead   :  { %v3337_v1 = vpop.eup %3336 }
 0xeae   :  { %870 = vrot.lane.b32.xlu0 %v3337_v1, %s3547_s6  ;;  %v3141_v1 = vpack.c.bf16 %v1149_v0, %v1148_v62 }
 0xeaf   :  { %v3339_v3 = vpop.eup %3338 }
 0xeb0   :  { %v861_v4 = vadd.f32 1.0, %v3339_v3  ;;  %3142 = vmatprep.subr.bf16.mxu1 %v3141_v1 }
 0xeb2   :  { %3340 = vrcp.f32 %v861_v4 }
 0xebc   :  { %v3341_v5 = vpop.eup %3340 }
 0xebd   :  { %v868_v8 = vmul.f32 %v3341_v5, %v866_v7 }
 0xf20   :  { %v871_v6 = vpop.permute.xlu0 %870 }
 0xf21   :  { %v873_v33 = vmul.f32 %v3341_v5, %v871_v6 }
 0xf23   :  { %875 = vrot.lane.b32.xlu1 %v873_v33, %s3552_s2 }
 0xf95   :  { %v876_v9 = vpop.permute.xlu1 %875 }
 0xf96   :  { %v878_v10 = vadd.f32 %v876_v9, %v868_v8 }
 0xf98   :  { %3342 = vtanh.f32 %v878_v10  ;;  %v973_v31 = vrot.slane %v878_v10, 6 }
 0xfa2   :  { %v3343_v11 = vpop.eup %3342 }
 0xfa3   :  { %881 = vrot.lane.b32.xlu0 %v3343_v11, %s3554_s7 }
0x1015   :  { %v882_v12 = vpop.permute.xlu0 %881 }
0x1016   :  { %v884_v13 = vmul.f32 %v3341_v5, %v882_v12  ;;  %v1099_v5 = vlaneseq }
0x1018   :  { %v886_v14 = vrot.slane %v884_v13, 2  ;;  %v3881_v6 = vand.u32 127, %v1099_v5 }
0x101a   :  { %887 = vrot.lane.b32.xlu1 %v886_v14, %s3553_s27  ;;  %vm1101_vm4 = vcmp.lt.s32.totalorder %v3881_v6, 8 }
0x101b   :  { %v1117_v11 = vsel %vm1101_vm4, %v3827_v41, %v3839_v60  ;;  %v1118_v13 = vsel %vm1101_vm4, %v3839_v60, %v3827_v41 }
0x108c   :  { %v3851_v16 = vpop.permute.xlu1 %887 }
0x108d   :  { %2976 = vmatmul.mubr.msk.f32.vlgmr.msra.gmra.mrb[6].mxu1 %vm348_vm3, %v3851_v16  ;;  %v1119_v33 = vsel %vm1101_vm4, %v3851_v16, %v3814_v15  ;;  %v1114_v9 = vsel %vm1101_vm4, %v3814_v15, %v3851_v16 }
0x108e   :  { %3144 = vmatpush3.bf16.msra.mxu1 %v3141_v1  ;;  %v1132_v10 = vrot.slane %v1119_v33, 6 }
0x108f   :  { %3149 = vmatprep.subr.bf16.mxu1 %v3548_v32 }
0x1160   :  { %v957_v17 = vpop.f32.mrb[6].mxu1 }
0x1161   :  { %v962_v18 = vrot.slane %v957_v17, 4  ;;  %v2977_v19 = vpop.f32.mrb[7].mxu1  ;;  %v1126_v17 = vrot.slane %v1114_v9, 4 }
0x1162   :  { %v1145_v19 = vsel %vm1140_vm5, %v1118_v13, %v1132_v10 }
0x1163   :  { %v964_v23 = vadd.f32 %v962_v18, %v3760_v21  ;;  %v1129_v18 = vrot.slane %v1117_v11, 2 }
0x1165   :  { %3344 = vtanh.f32 %v964_v23  ;;  %v2769_v25 = vmul.f32 -1.442695, %v964_v23 }
0x1167   :  { %3346 = vpow2.f32 %v2769_v25 }
0x116f   :  { %v3345_v24 = vpop.eup %3344 }
0x1170   :  { %977 = vrot.lane.b32.xlu0 %v3345_v24, %s3547_s6 }
0x1171   :  { %v3347_v26 = vpop.eup %3346 }
0x1172   :  { %v968_v27 = vadd.f32 1.0, %v3347_v26 }
0x1174   :  { %3348 = vrcp.f32 %v968_v27  ;;  %v2775_v27 = vld [vmem:[#allocation8] ss:$0 sm:$0xff] }
0x117e   :  { %v3349_v28 = vpop.eup %3348 }
0x117f   :  { %v975_v35 = vmul.f32 %v3349_v28, %v973_v31 }
0x11e2   :  { %v978_v29 = vpop.permute.xlu0 %977 }
0x11e3   :  { %v980_v30 = vmul.f32 %v3349_v28, %v978_v29 }
0x11e5   :  { %982 = vrot.lane.b32.xlu1 %v980_v30, %s3552_s2 }
0x1257   :  { %v983_v36 = vpop.permute.xlu1 %982 }
0x1258   :  { %v985_v20 = vadd.f32 %v983_v36, %v975_v35 }
0x125a   :  { %3350 = vtanh.f32 %v985_v20  ;;  %v1080_v54 = vrot.slane %v985_v20, 6 }
0x1264   :  { %v3351_v21 = vpop.eup %3350 }
0x1265   :  { %988 = vrot.lane.b32.xlu0 %v3351_v21, %s3554_s7 }
0x12d7   :  { %v989_v37 = vpop.permute.xlu0 %988 }
0x12d8   :  { %v991_v38 = vmul.f32 %v3349_v28, %v989_v37 }
0x12da   :  { %v993_v40 = vrot.slane %v991_v38, 4 }
0x12dc   :  { %994 = vrot.lane.b32.xlu1 %v993_v40, %s3553_s27 }
0x134e   :  { %v995_v42 = vpop.permute.xlu1 %994 }
0x134f   :  { %2983 = vmatmul.mubr.msk.f32.vlgmr.msra.gmra.mrb[8].mxu0 %vm348_vm3, %v995_v42  ;;  %v1120_v7 = vsel %vm1101_vm4, %v995_v42, %v3801_v59  ;;  %v1111_v8 = vsel %vm1101_vm4, %v3801_v59, %v995_v42 }
0x1350   :  { %3148 = vmatpush3.bf16.msra.mxu0 %v3145_v63  ;;  %v1135_v12 = vrot.slane %v1120_v7, 4  ;;  %v1123_v14 = vrot.slane %v1111_v8, 6 }
0x1351   :  { %3152 = vmatprep.subr.bf16.mxu0 %v3548_v32 }
0x1352   :  { %v1146_v41 = vsel %vm153_vm0, %v1145_v19, %v1135_v12 }
0x1422   :  { %v1064_v43 = vpop.f32.mrb[8].mxu0 }
0x1423   :  { %v1069_v44 = vrot.slane %v1064_v43, 2  ;;  %v2984_v45 = vpop.f32.mrb[9].mxu0 }
0x1425   :  { %v1071_v46 = vadd.f32 %v1069_v44, %v3762_v22 }
0x1427   :  { %3352 = vtanh.f32 %v1071_v46  ;;  %v2771_v48 = vmul.f32 -1.442695, %v1071_v46 }
0x1429   :  { %3354 = vpow2.f32 %v2771_v48 }
0x1431   :  { %v3353_v47 = vpop.eup %3352 }
0x1432   :  { %1084 = vrot.lane.b32.xlu0 %v3353_v47, %s3547_s6 }
0x1433   :  { %v3355_v49 = vpop.eup %3354 }
0x1434   :  { %v1075_v50 = vadd.f32 1.0, %v3355_v49 }
0x1436   :  { %3356 = vrcp.f32 %v1075_v50 }
0x1440   :  { %v3357_v51 = vpop.eup %3356 }
0x1441   :  { %v1082_v55 = vmul.f32 %v3357_v51, %v1080_v54  ;;  %v1322_v54 = vld [vmem:[%s4309_s10] sm:$0xff] }
0x14a4   :  { %v1085_v52 = vpop.permute.xlu0 %1084 }
0x14a5   :  { %v1087_v53 = vmul.f32 %v3357_v51, %v1085_v52 }
0x14a7   :  { %1089 = vrot.lane.b32.xlu1 %v1087_v53, %s3552_s2 }
0x1519   :  { %v1090_v56 = vpop.permute.xlu1 %1089 }
0x151a   :  { %v1092_v57 = vadd.f32 %v1090_v56, %v1082_v55  ;;  %v1323_v55 = vld [vmem:[%s4309_s10 + $0x8] sm:$0xff] }
0x151b   :  { %v3939_v56 = vpack.c.bf16 %v1323_v55, %v1322_v54 }
0x151c   :  { %3358 = vtanh.f32 %v1092_v57 }
0x1526   :  { %v3359_v22 = vpop.eup %3358 }
0x1527   :  { %1095 = vrot.lane.b32.xlu0 %v3359_v22, %s3554_s7 }
0x1599   :  { %v1096_v2 = vpop.permute.xlu0 %1095 }
0x159a   :  { %v1098_v3 = vmul.f32 %v3357_v51, %v1096_v2 }
0x159c   :  { %v1104_v4 = vrot.slane %v1098_v3, 6 }
0x159e   :  { %1105 = vrot.lane.b32.xlu1 %v1104_v4, %s3553_s27 }
0x1610   :  { %v1106_v59 = vpop.permute.xlu1 %1105 }
0x1611   :  { %v1108_v15 = vsel %vm1101_vm4, %v3788_v39, %v1106_v59  ;;  %v1121_v16 = vsel %vm1101_vm4, %v1106_v59, %v3788_v39  ;;  %v2772_v39 = vld [vmem:[#allocation7] ss:$0 sm:$0xff] }
0x1612   :  { %v1138_v23 = vrot.slane %v1121_v16, 2  ;;  %v1141_v24 = vsel %vm1140_vm5, %v1108_v15, %v1123_v14 }
0x1613   :  { %v1142_v25 = vsel %vm153_vm0, %v1141_v24, %v1126_v17 }
0x1614   :  { %v1144_v60 = vsel %vm1143_vm6, %v1142_v25, %v1129_v18  ;;  %v1147_v26 = vsel %vm1143_vm6, %v1146_v41, %v1138_v23 }
0x1615   :  { %2989 = vmatprep.mubr.msk.f32.mxu1 %vm348_vm3, %v1144_v60  ;;  %2996 = vmatprep.mubr.msk.f32.mxu0 %vm348_vm3, %v1144_v60 }
0x1616   :  { %2990 = vmatmul.mubr.msk.f32.vlgmr.msra.gmra.mrb[8].mxu1 %vm348_vm3, %v1147_v26  ;;  %2997 = vmatmul.mubr.msk.f32.vlgmr.msra.gmra.mrb[10].mxu0 %vm348_vm3, %v1147_v26 }
0x1617   :  { %3003 = vmatprep.mubr.msk.f32.mxu1 %vm3549_vm2, %v3550_v34  ;;  %3010 = vmatprep.mubr.msk.f32.mxu0 %vm3549_vm2, %v3550_v34 }
0x1618   :  { %3151 = vmatpush3.bf16.msra.mxu1 %v3939_v56  ;;  %3154 = vmatpush3.bf16.msra.mxu0 %v3939_v56 }
0x1619   :  { %3155 = vmatprep.subr.bf16.mxu1 %v3548_v32  ;;  %3158 = vmatprep.subr.bf16.mxu0 %v3548_v32 }
0x16e9   :  { %v2991_v28 = vpop.f32.mrb[8].mxu1  ;;  %v2998_v29 = vpop.f32.mrb[10].mxu0 }
0x16ea   :  { %v1235_v30 = vadd.f32 %v2991_v28, %v2772_v39  ;;  %v1319_v31 = vadd.f32 %v2998_v29, %v2775_v27  ;;  %v1229_v35 = vpop.f32.mrb[9].mxu1  ;;  %v1313_v36 = vpop.f32.mrb[11].mxu0 }
0x16eb   :  { %v1230_v20 = vadd.f32 %v2772_v39, %v1229_v35  ;;  %v1314_v21 = vadd.f32 %v2775_v27, %v1313_v36 }
0x16ec   :  { %v1325_v37 = vrot.slane %v1319_v31, 6  ;;  %v1346_v38 = vrot.slane %v1319_v31, 2 }
0x16ed   :  { %v1672_v40 = vrot.slane %v1314_v21, 6  ;;  %v1779_v42 = vrot.slane %v1314_v21, 2 }
0x16ee   :  { %v3922_v43 = vadd.f32 %v1325_v37, %v1230_v20  ;;  %v3924_v44 = vadd.f32 %v1346_v38, %v1230_v20 }
0x16ef   :  { %v3926_v45 = vadd.f32 %v1672_v40, %v1235_v30  ;;  %v3928_v46 = vadd.f32 %v1779_v42, %v1235_v30 }
0x16f0   :  { %3360 = vtanh.f32 %v3922_v43  ;;  %v2778_v48 = vmul.f32 -1.442695, %v3922_v43 }
0x16f2   :  { %3362 = vpow2.f32 %v2778_v48 }
0x16fa   :  { %v3361_v47 = vpop.eup %3360 }
0x16fb   :  { %1336 = vrot.lane.b32.xlu0 %v3361_v47, %s3547_s6 }
0x16fc   :  { %v3363_v49 = vpop.eup %3362 }
0x16fd   :  { %v1331_v50 = vadd.f32 1.0, %v3363_v49 }
0x16ff   :  { %3364 = vrcp.f32 %v1331_v50 }
0x1709   :  { %v3365_v51 = vpop.eup %3364 }
0x176d   :  { %v1337_v52 = vpop.permute.xlu0 %1336 }
0x176e   :  { %v1339_v53 = vmul.f32 %v3365_v51, %v1337_v52 }
0x1770   :  { %3366 = vtanh.f32 %v1339_v53  ;;  %v1436_v61 = vrot.slane %v1339_v53, 6 }
0x177a   :  { %v3367_v57 = vpop.eup %3366 }
0x177b   :  { %1342 = vrot.lane.b32.xlu1 %v3367_v57, %s3551_s5 }
0x17ed   :  { %v1343_v22 = vpop.permute.xlu1 %1342 }
0x17ee   :  { %v1345_v58 = vmul.f32 %v3365_v51, %v1343_v22 }
0x17f0   :  { %1350 = vrot.lane.b32.xlu0 %v1345_v58, %s3553_s27 }
0x17f4   :  { %1437 = vrot.lane.b32.xlu0 %v1436_v61, %s3552_s2 }
0x1862   :  { %v3948_v62 = vpop.permute.xlu0 %1350 }
0x1863   :  { %3004 = vmatmul.mubr.msk.f32.vlgmr.msra.gmra.mrb[10].mxu1 %vm348_vm3, %v3948_v62 }
0x1864   :  { %3157 = vmatpush3.bf16.msra.mxu1 %v3939_v56  ;;  %3017 = vmatprep.mubr.msk.f32.mxu1 %vm3549_vm2, %v3550_v34 }
0x1865   :  { %3161 = vmatprep.subr.bf16.mxu1 %v3548_v32 }
0x1866   :  { %v1438_v11 = vpop.permute.xlu0 %1437 }
0x1936   :  { %v1420_v63 = vpop.f32.mrb[10].mxu1 }
0x1937   :  { %v1425_v0 = vrot.slane %v1420_v63, 6  ;;  %v3005_v1 = vpop.f32.mrb[11].mxu1 }
0x1939   :  { %v1427_v2 = vadd.f32 %v1425_v0, %v3924_v44 }
0x193b   :  { %3368 = vtanh.f32 %v1427_v2  ;;  %v2780_v4 = vmul.f32 -1.442695, %v1427_v2 }
0x193d   :  { %3370 = vpow2.f32 %v2780_v4 }
0x1945   :  { %v3369_v3 = vpop.eup %3368 }
0x1946   :  { %1442 = vrot.lane.b32.xlu1 %v3369_v3, %s3547_s6 }
0x1947   :  { %v3371_v33 = vpop.eup %3370 }
0x1948   :  { %v1431_v7 = vadd.f32 1.0, %v3371_v33 }
0x194a   :  { %3372 = vrcp.f32 %v1431_v7 }
0x1954   :  { %v3373_v8 = vpop.eup %3372 }
0x1955   :  { %v1440_v12 = vmul.f32 %v3373_v8, %v1438_v11 }
0x19b8   :  { %v1443_v9 = vpop.permute.xlu1 %1442 }
0x19b9   :  { %v1445_v10 = vmul.f32 %v3373_v8, %v1443_v9 }
0x19bb   :  { %1447 = vrot.lane.b32.xlu1 %v1445_v10, %s3552_s2 }
0x1a2d   :  { %v1448_v13 = vpop.permute.xlu1 %1447 }
0x1a2e   :  { %v1450_v14 = vadd.f32 %v1448_v13, %v1440_v12 }
0x1a30   :  { %3374 = vtanh.f32 %v1450_v14  ;;  %v1545_v30 = vrot.slane %v1450_v14, 6 }
0x1a3a   :  { %v3375_v59 = vpop.eup %3374 }
0x1a3b   :  { %1453 = vrot.lane.b32.xlu0 %v3375_v59, %s3554_s7 }
0x1aad   :  { %v1454_v17 = vpop.permute.xlu0 %1453 }
0x1aae   :  { %v1456_v15 = vmul.f32 %v3373_v8, %v1454_v17 }
0x1ab0   :  { %v1458_v16 = vrot.slane %v1456_v15, 2 }
0x1ab2   :  { %1459 = vrot.lane.b32.xlu1 %v1458_v16, %s3553_s27 }
0x1b24   :  { %v3961_v18 = vpop.permute.xlu1 %1459 }
0x1b25   :  { %3011 = vmatmul.mubr.msk.f32.vlgmr.msra.gmra.mrb[12].mxu0 %vm348_vm3, %v3961_v18 }
0x1b26   :  { %3160 = vmatpush3.bf16.msra.mxu0 %v3939_v56  ;;  %3024 = vmatprep.mubr.msk.f32.mxu0 %vm3549_vm2, %v3550_v34 }
0x1b27   :  { %3164 = vmatprep.subr.bf16.mxu0 %v3548_v32 }
0x1bf8   :  { %v1529_v19 = vpop.f32.mrb[12].mxu0 }
0x1bf9   :  { %v1534_v23 = vrot.slane %v1529_v19, 4  ;;  %v3012_v24 = vpop.f32.mrb[13].mxu0 }
0x1bfb   :  { %v1536_v25 = vadd.f32 %v1534_v23, %v3922_v43 }
0x1bfd   :  { %3376 = vtanh.f32 %v1536_v25  ;;  %v2782_v60 = vmul.f32 -1.442695, %v1536_v25 }
0x1bff   :  { %3378 = vpow2.f32 %v2782_v60 }
0x1c07   :  { %v3377_v41 = vpop.eup %3376 }
0x1c08   :  { %1549 = vrot.lane.b32.xlu0 %v3377_v41, %s3547_s6 }
0x1c09   :  { %v3379_v26 = vpop.eup %3378 }
0x1c0a   :  { %v1540_v39 = vadd.f32 1.0, %v3379_v26 }
0x1c0c   :  { %3380 = vrcp.f32 %v1540_v39 }
0x1c16   :  { %v3381_v27 = vpop.eup %3380 }
0x1c17   :  { %v1547_v31 = vmul.f32 %v3381_v27, %v1545_v30 }
0x1c7a   :  { %v1550_v28 = vpop.permute.xlu0 %1549 }
0x1c7b   :  { %v1552_v29 = vmul.f32 %v3381_v27, %v1550_v28 }
0x1c7d   :  { %1554 = vrot.lane.b32.xlu1 %v1552_v29, %s3552_s2 }
0x1cef   :  { %v1555_v35 = vpop.permute.xlu1 %1554 }
0x1cf0   :  { %v1557_v36 = vadd.f32 %v1555_v35, %v1547_v31 }
0x1cf2   :  { %3382 = vtanh.f32 %v1557_v36  ;;  %v1652_v57 = vrot.slane %v1557_v36, 6 }
0x1cfc   :  { %v3383_v20 = vpop.eup %3382 }
0x1cfd   :  { %1560 = vrot.lane.b32.xlu0 %v3383_v20, %s3554_s7 }
0x1d6f   :  { %v1561_v21 = vpop.permute.xlu0 %1560 }
0x1d70   :  { %v1563_v37 = vmul.f32 %v3381_v27, %v1561_v21 }
0x1d72   :  { %v1565_v38 = vrot.slane %v1563_v37, 4 }
0x1d74   :  { %1566 = vrot.lane.b32.xlu1 %v1565_v38, %s3553_s27 }
0x1de6   :  { %v3974_v40 = vpop.permute.xlu1 %1566 }
0x1de7   :  { %3018 = vmatmul.mubr.msk.f32.vlgmr.msra.gmra.mrb[12].mxu1 %vm348_vm3, %v3974_v40 }
0x1de8   :  { %3163 = vmatpush3.bf16.msra.mxu1 %v3939_v56  ;;  %3031 = vmatprep.mubr.msk.f32.mxu1 %vm3549_vm2, %v3550_v34 }
0x1de9   :  { %3167 = vmatprep.subr.bf16.mxu1 %v3548_v32 }
0x1eba   :  { %v1636_v42 = vpop.f32.mrb[12].mxu1 }
0x1ebb   :  { %v1641_v43 = vrot.slane %v1636_v42, 2  ;;  %v3019_v47 = vpop.f32.mrb[13].mxu1 }
0x1ebd   :  { %v1643_v48 = vadd.f32 %v1641_v43, %v3924_v44 }
0x1ebf   :  { %3384 = vtanh.f32 %v1643_v48  ;;  %v2784_v50 = vmul.f32 -1.442695, %v1643_v48 }
0x1ec1   :  { %3386 = vpow2.f32 %v2784_v50 }
0x1ec9   :  { %v3385_v49 = vpop.eup %3384 }
0x1eca   :  { %1656 = vrot.lane.b32.xlu0 %v3385_v49, %s3547_s6 }
0x1ecb   :  { %v3387_v51 = vpop.eup %3386 }
0x1ecc   :  { %v1647_v52 = vadd.f32 1.0, %v3387_v51 }
0x1ece   :  { %3388 = vrcp.f32 %v1647_v52 }
0x1ed8   :  { %v3389_v53 = vpop.eup %3388 }
0x1ed9   :  { %v1654_v22 = vmul.f32 %v3389_v53, %v1652_v57 }
0x1f3c   :  { %v1657_v54 = vpop.permute.xlu0 %1656 }
0x1f3d   :  { %v1659_v55 = vmul.f32 %v3389_v53, %v1657_v54 }
0x1f3f   :  { %1661 = vrot.lane.b32.xlu1 %v1659_v55, %s3552_s2 }
0x1fb1   :  { %v1662_v58 = vpop.permute.xlu1 %1661 }
0x1fb2   :  { %v1664_v61 = vadd.f32 %v1662_v58, %v1654_v22 }
0x1fb4   :  { %3390 = vtanh.f32 %v1664_v61  ;;  %v1760_v14 = vrot.slane %v1664_v61, 6 }
0x1fbe   :  { %v3391_v44 = vpop.eup %3390 }
0x1fbf   :  { %1667 = vrot.lane.b32.xlu0 %v3391_v44, %s3554_s7 }
0x2031   :  { %v1668_v63 = vpop.permute.xlu0 %1667 }
0x2032   :  { %v1670_v0 = vmul.f32 %v3389_v53, %v1668_v63 }
0x2034   :  { %v1676_v1 = vrot.slane %v1670_v0, 6 }
0x2036   :  { %1677 = vrot.lane.b32.xlu1 %v1676_v1, %s3553_s27 }
0x20a8   :  { %v3987_v2 = vpop.permute.xlu1 %1677 }
0x20a9   :  { %3025 = vmatmul.mubr.msk.f32.vlgmr.msra.gmra.mrb[14].mxu0 %vm348_vm3, %v3987_v2 }
0x20aa   :  { %3166 = vmatpush3.bf16.msra.mxu0 %v3939_v56  ;;  %3038 = vmatprep.mubr.msk.f32.mxu0 %vm3549_vm2, %v3550_v34 }
0x217c   :  { %v1747_v3 = vpop.f32.mrb[14].mxu0 }
0x217d   :  { %v1751_v4 = vadd.f32 %v1747_v3, %v3926_v45  ;;  %v3026_v33 = vpop.f32.mrb[15].mxu0 }
0x217f   :  { %3392 = vtanh.f32 %v1751_v4  ;;  %v2786_v8 = vmul.f32 -1.442695, %v1751_v4 }
0x2181   :  { %3394 = vpow2.f32 %v2786_v8 }
0x2189   :  { %v3393_v7 = vpop.eup %3392 }
0x218a   :  { %1764 = vrot.lane.b32.xlu0 %v3393_v7, %s3547_s6 }
0x218b   :  { %v3395_v9 = vpop.eup %3394 }
0x218c   :  { %v1755_v10 = vadd.f32 1.0, %v3395_v9 }
0x218e   :  { %3396 = vrcp.f32 %v1755_v10 }
0x2198   :  { %v3397_v11 = vpop.eup %3396 }
0x2199   :  { %v1762_v59 = vmul.f32 %v3397_v11, %v1760_v14 }
0x21fc   :  { %v1765_v12 = vpop.permute.xlu0 %1764 }
0x21fd   :  { %v1767_v13 = vmul.f32 %v3397_v11, %v1765_v12 }
0x21ff   :  { %1769 = vrot.lane.b32.xlu1 %v1767_v13, %s3552_s2 }
0x2271   :  { %v1770_v17 = vpop.permute.xlu1 %1769 }
0x2272   :  { %v1772_v15 = vadd.f32 %v1770_v17, %v1762_v59 }
0x2274   :  { %3398 = vtanh.f32 %v1772_v15  ;;  %v1869_v35 = vrot.slane %v1772_v15, 6 }
0x227e   :  { %v3399_v16 = vpop.eup %3398 }
0x227f   :  { %1775 = vrot.lane.b32.xlu0 %v3399_v16, %s3554_s7 }
0x22f1   :  { %v1776_v19 = vpop.permute.xlu0 %1775 }
0x22f2   :  { %v1778_v23 = vmul.f32 %v3397_v11, %v1776_v19 }
0x22f4   :  { %1783 = vrot.lane.b32.xlu1 %v1778_v23, %s3553_s27 }
0x2366   :  { %v3999_v24 = vpop.permute.xlu1 %1783 }
0x2367   :  { %3032 = vmatmul.mubr.msk.f32.vlgmr.msra.gmra.mrb[14].mxu1 %vm348_vm3, %v3999_v24 }
0x2368   :  { %3169 = vmatpush3.bf16.msra.mxu1 %v3939_v56  ;;  %3045 = vmatprep.mubr.msk.f32.mxu1 %vm3549_vm2, %v3550_v34 }
0x243a   :  { %v1853_v25 = vpop.f32.mrb[14].mxu1 }
0x243b   :  { %v1858_v41 = vrot.slane %v1853_v25, 6  ;;  %v3033_v60 = vpop.f32.mrb[15].mxu1 }
0x243c   :  { %v2117_v60 = vsel %vm1101_vm4, %v3987_v2, %v3999_v24 }
0x243d   :  { %v1860_v26 = vadd.f32 %v1858_v41, %v3928_v46 }
0x243f   :  { %3400 = vtanh.f32 %v1860_v26  ;;  %v2788_v27 = vmul.f32 -1.442695, %v1860_v26 }
0x2441   :  { %3402 = vpow2.f32 %v2788_v27 }
0x2449   :  { %v3401_v39 = vpop.eup %3400 }
0x244a   :  { %1873 = vrot.lane.b32.xlu0 %v3401_v39, %s3547_s6 }
0x244b   :  { %v3403_v28 = vpop.eup %3402 }
0x244c   :  { %v1864_v29 = vadd.f32 1.0, %v3403_v28 }
0x244e   :  { %3404 = vrcp.f32 %v1864_v29  ;;  %v2164_v29 = vld [vmem:[%s4310_s11 + $0x8] sm:$0xff] }
0x2458   :  { %v3405_v30 = vpop.eup %3404 }
0x2459   :  { %v1871_v36 = vmul.f32 %v3405_v30, %v1869_v35  ;;  %v2165_v35 = vld [vmem:[%s4310_s11 + $0x10] sm:$0xff] }
0x24bc   :  { %v1874_v31 = vpop.permute.xlu0 %1873 }
0x24bd   :  { %v1876_v56 = vmul.f32 %v3405_v30, %v1874_v31  ;;  %v2163_v31 = vld [vmem:[%s4310_s11] sm:$0xff] }
0x24bf   :  { %1878 = vrot.lane.b32.xlu1 %v1876_v56, %s3552_s2 }
0x2531   :  { %v1879_v20 = vpop.permute.xlu1 %1878 }
0x2532   :  { %v1881_v21 = vadd.f32 %v1879_v20, %v1871_v36  ;;  %v2168_v36 = vld [vmem:[%s4310_s11 + $0x28] sm:$0xff]  ;;  %v2170_v20 = vld [vmem:[%s4310_s11 + $0x38] sm:$0xff] }
0x2534   :  { %3406 = vtanh.f32 %v1881_v21  ;;  %v1976_v61 = vrot.slane %v1881_v21, 6  ;;  %v3172_v21 = vpack.c.bf16 %v2165_v35, %v2163_v31  ;;  %v2283_v31 = vld [vmem:[#allocation10 + $0x18] sm:$0xff]  ;;  %v2301_v35 = vld [vmem:[#allocation10 + $0xa8] sm:$0xff] }
0x253e   :  { %v3407_v37 = vpop.eup %3406 }
0x253f   :  { %1884 = vrot.lane.b32.xlu0 %v3407_v37, %s3554_s7  ;;  %v3174_v37 = vpack.c.bf16 %v2170_v20, %v2168_v36 }
0x25b1   :  { %v1885_v38 = vpop.permute.xlu0 %1884 }
0x25b2   :  { %v1887_v42 = vmul.f32 %v3405_v30, %v1885_v38  ;;  %v2166_v30 = vld [vmem:[%s4310_s11 + $0x18] sm:$0xff]  ;;  %v2167_v38 = vld [vmem:[%s4310_s11 + $0x20] sm:$0xff] }
0x25b3   :  { %v3170_v56 = vpack.c.bf16 %v2166_v30, %v2164_v29  ;;  %v2282_v30 = vld [vmem:[#allocation10 + $0x10] sm:$0xff] }
0x25b4   :  { %v1889_v43 = vrot.slane %v1887_v42, 2  ;;  %v2169_v42 = vld [vmem:[%s4310_s11 + $0x30] sm:$0xff]  ;;  %v3208_v36 = vpack.c.bf16 %v2283_v31, %v2282_v30  ;;  %v2394_v31 = vld [vmem:[%s4314_s15 + $0x20] sm:$0xff] }
0x25b5   :  { %3171 = vmatprep.subr.bf16.mxu0 %v3170_v56  ;;  %v2300_v56 = vld [vmem:[#allocation10 + $0xa0] sm:$0xff] }
0x25b6   :  { %1890 = vrot.lane.b32.xlu1 %v1889_v43, %s3553_s27  ;;  %v2172_v43 = vld [vmem:[%s4310_s11 + $0x48] sm:$0xff]  ;;  %v3210_v20 = vpack.c.bf16 %v2301_v35, %v2300_v56 }
0x25b7   :  { %v2395_v56 = vld [vmem:[%s4314_s15 + $0x28] sm:$0xff] }
0x25b8   :  { %v3241_v35 = vpack.c.bf16 %v2395_v56, %v2394_v31 }
0x2628   :  { %v4011_v47 = vpop.permute.xlu1 %1890 }
0x2629   :  { %3039 = vmatmul.mubr.msk.f32.vlgmr.msra.gmra.mrb[16].mxu0 %vm348_vm3, %v4011_v47  ;;  %v2119_v26 = vsel %vm1101_vm4, %v4011_v47, %v3974_v40 }
0x262a   :  { %2271 = vmatprep.mubr.f32.mxu0 %v3550_v34  ;;  %3173 = vmatpush1.bf16.msra.mxu0 %v3172_v21  ;;  %v2284_v21 = vld [vmem:[#allocation10 + $0x20] sm:$0xff] }
0x262b   :  { %3175 = vmatprep.subr.bf16.mxu0 %v3174_v37  ;;  %v2285_v37 = vld [vmem:[#allocation10 + $0x28] sm:$0xff] }
0x26fc   :  { %v1960_v48 = vpop.f32.mrb[16].mxu0 }
0x26fd   :  { %v1965_v49 = vrot.slane %v1960_v48, 4  ;;  %v3040_v50 = vpop.f32.mrb[17].mxu0  ;;  %v2174_v48 = vld [vmem:[%s4310_s11 + $0x58] sm:$0xff] }
0x26fe   :  { %v3176_v50 = vpack.c.bf16 %v2169_v42, %v2167_v38  ;;  %v2302_v38 = vld [vmem:[#allocation10 + $0xb0] sm:$0xff]  ;;  %v2303_v42 = vld [vmem:[#allocation10 + $0xb8] sm:$0xff] }
0x26ff   :  { %v1967_v51 = vadd.f32 %v1965_v49, %v3926_v45  ;;  %v2114_v49 = vsel %vm1101_vm4, %v3974_v40, %v4011_v47  ;;  %v2178_v40 = vld [vmem:[%s4310_s11 + $0x78] sm:$0xff]  ;;  %v2118_v47 = vsel %vm1101_vm4, %v3999_v24, %v3987_v2 }
0x2700   :  { %3177 = vmatpush1.bf16.msra.mxu0 %v3176_v50  ;;  %v2182_v2 = vld [vmem:[%s4310_s11 + $0x98] sm:$0xff]  ;;  %v2287_v50 = vld [vmem:[#allocation10 + $0x38] sm:$0xff] }
0x2701   :  { %3408 = vtanh.f32 %v1967_v51  ;;  %v2790_v53 = vmul.f32 -1.442695, %v1967_v51  ;;  %v3178_v51 = vpack.c.bf16 %v2174_v48, %v2172_v43  ;;  %v3212_v43 = vpack.c.bf16 %v2285_v37, %v2284_v21  ;;  %v2398_v37 = vld [vmem:[%s4314_s15 + $0x40] sm:$0xff] }
0x2702   :  { %v3214_v48 = vpack.c.bf16 %v2303_v42, %v2302_v38  ;;  %v2399_v38 = vld [vmem:[%s4314_s15 + $0x48] sm:$0xff] }
0x2703   :  { %3410 = vpow2.f32 %v2790_v53  ;;  %v2173_v53 = vld [vmem:[%s4310_s11 + $0x50] sm:$0xff]  ;;  %3179 = vmatprep.subr.bf16.mxu0 %v3178_v51  ;;  %v3247_v42 = vpack.c.bf16 %v2399_v38, %v2398_v37 }
0x270b   :  { %v3409_v52 = vpop.eup %3408 }
0x270c   :  { %1980 = vrot.lane.b32.xlu0 %v3409_v52, %s3547_s6  ;;  %v2171_v52 = vld [vmem:[%s4310_s11 + $0x40] sm:$0xff] }
0x270d   :  { %v3411_v54 = vpop.eup %3410 }
0x270e   :  { %v1971_v55 = vadd.f32 1.0, %v3411_v54  ;;  %v2176_v54 = vld [vmem:[%s4310_s11 + $0x68] sm:$0xff] }
0x2710   :  { %3412 = vrcp.f32 %v1971_v55  ;;  %v3180_v55 = vpack.c.bf16 %v2173_v53, %v2171_v52  ;;  %v2304_v52 = vld [vmem:[#allocation10 + $0xc0] sm:$0xff]  ;;  %v2305_v53 = vld [vmem:[#allocation10 + $0xc8] sm:$0xff] }
0x2712   :  { %3181 = vmatpush1.bf16.msra.mxu0 %v3180_v55  ;;  %v2288_v55 = vld [vmem:[#allocation10 + $0x40] sm:$0xff] }
0x271a   :  { %v3413_v57 = vpop.eup %3412 }
0x271b   :  { %v1978_v44 = vmul.f32 %v3413_v57, %v1976_v61  ;;  %v2180_v61 = vld [vmem:[%s4310_s11 + $0x88] sm:$0xff] }
0x277e   :  { %v1981_v22 = vpop.permute.xlu0 %1980 }
0x277f   :  { %v1983_v58 = vmul.f32 %v3413_v57, %v1981_v22  ;;  %v2175_v22 = vld [vmem:[%s4310_s11 + $0x60] sm:$0xff] }
0x2781   :  { %1985 = vrot.lane.b32.xlu1 %v1983_v58, %s3552_s2  ;;  %v2177_v58 = vld [vmem:[%s4310_s11 + $0x70] sm:$0xff] }
0x27f3   :  { %v1986_v63 = vpop.permute.xlu1 %1985 }
0x27f4   :  { %v1988_v0 = vadd.f32 %v1986_v63, %v1978_v44  ;;  %v3184_v44 = vpack.c.bf16 %v2177_v58, %v2175_v22  ;;  %v3186_v63 = vpack.c.bf16 %v2182_v2, %v2180_v61  ;;  %v2306_v22 = vld [vmem:[#allocation10 + $0xd0] sm:$0xff]  ;;  %v2307_v58 = vld [vmem:[#allocation10 + $0xd8] sm:$0xff] }
0x27f5   :  { %v3222_v2 = vpack.c.bf16 %v2307_v58, %v2306_v22 }
0x27f6   :  { %3414 = vtanh.f32 %v1988_v0  ;;  %v2083_v16 = vrot.slane %v1988_v0, 6  ;;  %v2179_v0 = vld [vmem:[%s4310_s11 + $0x80] sm:$0xff] }
0x2800   :  { %v3415_v45 = vpop.eup %3414 }
0x2801   :  { %1991 = vrot.lane.b32.xlu0 %v3415_v45, %s3554_s7  ;;  %v2181_v45 = vld [vmem:[%s4310_s11 + $0x90] sm:$0xff] }
0x2873   :  { %v1992_v1 = vpop.permute.xlu0 %1991 }
0x2874   :  { %v1994_v3 = vmul.f32 %v3413_v57, %v1992_v1  ;;  %v3182_v57 = vpack.c.bf16 %v2178_v40, %v2176_v54  ;;  %v2184_v1 = vld [vmem:[%s4310_s11 + $0xa8] sm:$0xff] }
0x2876   :  { %v1996_v4 = vrot.slane %v1994_v3, 4  ;;  %3183 = vmatprep.subr.bf16.mxu0 %v3182_v57  ;;  %v3188_v3 = vpack.c.bf16 %v2181_v45, %v2179_v0  ;;  %v2289_v57 = vld [vmem:[#allocation10 + $0x48] sm:$0xff] }
0x2877   :  { %3185 = vmatpush1.bf16.msra.mxu0 %v3184_v44  ;;  %v3220_v61 = vpack.c.bf16 %v2289_v57, %v2288_v55  ;;  %v2291_v44 = vld [vmem:[#allocation10 + $0x58] sm:$0xff]  ;;  %v2309_v0 = vld [vmem:[#allocation10 + $0xe8] sm:$0xff] }
0x2878   :  { %1997 = vrot.lane.b32.xlu1 %v1996_v4, %s3553_s27  ;;  %3187 = vmatprep.subr.bf16.mxu0 %v3186_v63  ;;  %v2308_v63 = vld [vmem:[#allocation10 + $0xe0] sm:$0xff] }
0x287b   :  { %3189 = vmatpush1.bf16.msra.mxu0 %v3188_v3 }
0x28ea   :  { %v4021_v33 = vpop.permute.xlu1 %1997 }
0x28eb   :  { %3046 = vmatmul.mubr.msk.f32.vlgmr.msra.gmra.mrb[16].mxu1 %vm348_vm3, %v4021_v33  ;;  %v2111_v41 = vsel %vm1101_vm4, %v3961_v18, %v4021_v33  ;;  %v2120_v24 = vsel %vm1101_vm4, %v4021_v33, %v3961_v18  ;;  %v2186_v18 = vld [vmem:[%s4310_s11 + $0xb8] sm:$0xff]  ;;  %v2183_v33 = vld [vmem:[%s4310_s11 + $0xa0] sm:$0xff] }
0x28ec   :  { %v3190_v4 = vpack.c.bf16 %v2186_v18, %v2184_v1  ;;  %v3226_v1 = vpack.c.bf16 %v2309_v0, %v2308_v63  ;;  %v2405_v63 = vld [vmem:[%s4314_s15 + $0x78] sm:$0xff] }
0x28ee   :  { %3191 = vmatprep.subr.bf16.mxu0 %v3190_v4 }
0x29be   :  { %v2067_v7 = vpop.f32.mrb[16].mxu1 }
0x29bf   :  { %v2072_v8 = vrot.slane %v2067_v7, 2  ;;  %v3047_v9 = vpop.f32.mrb[17].mxu1  ;;  %v2185_v7 = vld [vmem:[%s4310_s11 + $0xb0] sm:$0xff] }
0x29c0   :  { %v2190_v9 = vld [vmem:[%s4310_s11 + $0xd8] sm:$0xff] }
0x29c1   :  { %v2074_v10 = vadd.f32 %v2072_v8, %v3928_v46  ;;  %v2188_v8 = vld [vmem:[%s4310_s11 + $0xc8] sm:$0xff] }
0x29c3   :  { %3416 = vtanh.f32 %v2074_v10  ;;  %v2792_v12 = vmul.f32 -1.442695, %v2074_v10  ;;  %v3192_v10 = vpack.c.bf16 %v2185_v7, %v2183_v33 }
0x29c5   :  { %3418 = vpow2.f32 %v2792_v12  ;;  %v2187_v12 = vld [vmem:[%s4310_s11 + $0xc0] sm:$0xff]  ;;  %3193 = vmatpush1.bf16.msra.mxu0 %v3192_v10 }
0x29cd   :  { %v3417_v11 = vpop.eup %3416 }
0x29ce   :  { %2087 = vrot.lane.b32.xlu0 %v3417_v11, %s3547_s6  ;;  %v3194_v11 = vpack.c.bf16 %v2190_v9, %v2188_v8 }
0x29cf   :  { %v3419_v13 = vpop.eup %3418 }
0x29d0   :  { %v2078_v14 = vadd.f32 1.0, %v3419_v13  ;;  %v2189_v13 = vld [vmem:[%s4310_s11 + $0xd0] sm:$0xff]  ;;  %3195 = vmatprep.subr.bf16.mxu0 %v3194_v11 }
0x29d2   :  { %3420 = vrcp.f32 %v2078_v14  ;;  %v2192_v14 = vld [vmem:[%s4310_s11 + $0xe8] sm:$0xff] }
0x29dc   :  { %v3421_v59 = vpop.eup %3420 }
0x29dd   :  { %v2085_v19 = vmul.f32 %v3421_v59, %v2083_v16  ;;  %v2191_v16 = vld [vmem:[%s4310_s11 + $0xe0] sm:$0xff] }
0x2a40   :  { %v2088_v17 = vpop.permute.xlu0 %2087 }
0x2a41   :  { %v2090_v15 = vmul.f32 %v3421_v59, %v2088_v17  ;;  %v3196_v17 = vpack.c.bf16 %v2189_v13, %v2187_v12 }
0x2a43   :  { %2092 = vrot.lane.b32.xlu1 %v2090_v15, %s3552_s2  ;;  %3197 = vmatpush1.bf16.msra.mxu0 %v3196_v17  ;;  %v2292_v17 = vld [vmem:[#allocation10 + $0x60] sm:$0xff] }
0x2ab5   :  { %v2093_v23 = vpop.permute.xlu1 %2092 }
0x2ab6   :  { %v2095_v25 = vadd.f32 %v2093_v23, %v2085_v19  ;;  %v2193_v19 = vld [vmem:[%s4310_s11 + $0xf0] sm:$0xff] }
0x2ab7   :  { %v3200_v23 = vpack.c.bf16 %v2193_v19, %v2191_v16  ;;  %v2310_v19 = vld [vmem:[#allocation10 + $0xf0] sm:$0xff] }
0x2ab8   :  { %3422 = vtanh.f32 %v2095_v25  ;;  %v2296_v25 = vld [vmem:[#allocation10 + $0x80] sm:$0xff] }
0x2ac2   :  { %v3423_v46 = vpop.eup %3422 }
0x2ac3   :  { %2098 = vrot.lane.b32.xlu0 %v3423_v46, %s3554_s7  ;;  %v2297_v46 = vld [vmem:[#allocation10 + $0x88] sm:$0xff] }
0x2ac7   :  { %2123 = vrot.lane.b32.xlu0 %v2111_v41, %s3552_s2  ;;  %v2280_v41 = vld [vmem:[#allocation10] sm:$0xff] }
0x2acb   :  { %2131 = vrot.lane.b32.xlu0 %v2117_v60, %s3551_s5  ;;  %v3202_v60 = vpack.c.bf16 %v2297_v46, %v2296_v25  ;;  %v2294_v46 = vld [vmem:[#allocation10 + $0x70] sm:$0xff] }
0x2acd   :  { %3203 = vmatprep.subr.bf16.mxu1 %v3202_v60 }
0x2acf   :  { %2139 = vrot.lane.b32.xlu0 %v2119_v26, %s3553_s27  ;;  %v2281_v26 = vld [vmem:[#allocation10 + $0x8] sm:$0xff] }
0x2b35   :  { %v2099_v39 = vpop.permute.xlu0 %2098 }
0x2b36   :  { %v2101_v27 = vmul.f32 %v3421_v59, %v2099_v39  ;;  %v2194_v59 = vld [vmem:[%s4310_s11 + $0xf8] sm:$0xff]  ;;  %s3556_s11 = smov 112  }
0x2b37   :  { %v3198_v15 = vpack.c.bf16 %v2194_v59, %v2192_v14  ;;  %v2298_v39 = vld [vmem:[#allocation10 + $0x90] sm:$0xff] }
0x2b38   :  { %v2104_v28 = vrot.slane %v2101_v27, 6  ;;  %v2299_v27 = vld [vmem:[#allocation10 + $0x98] sm:$0xff] }
0x2b39   :  { %3199 = vmatprep.subr.bf16.mxu0 %v3198_v15  ;;  %v3206_v29 = vpack.c.bf16 %v2299_v27, %v2298_v39  ;;  %v2124_v18 = vpop.permute.xlu0 %2123  ;;  %v2293_v15 = vld [vmem:[#allocation10 + $0x68] sm:$0xff]  ;;  %v2391_v39 = vld [vmem:[%s4314_s15 + $0x8] sm:$0xff] }
0x2b3a   :  { %2105 = vrot.lane.b32.xlu1 %v2104_v28, %s3553_s27  ;;  %3201 = vmatpush1.bf16.msra.mxu0 %v3200_v23  ;;  %v3204_v28 = vpack.c.bf16 %v2281_v26, %v2280_v41  ;;  %v3228_v16 = vpack.c.bf16 %v2293_v15, %v2292_v17  ;;  %v2311_v23 = vld [vmem:[#allocation10 + $0xf8] sm:$0xff]  ;;  %v2392_v27 = vld [vmem:[%s4314_s15 + $0x10] sm:$0xff]  ;;  %v2794_v15 = vld [vmem:[%s4315_s16] ss:$0 sm:$0xff] }
0x2b3b   :  { %3234 = vmatprep.subr.bf16.mxu0 %v3548_v32  ;;  %v3230_v25 = vpack.c.bf16 %v2311_v23, %v2310_v19  ;;  %v2295_v41 = vld [vmem:[#allocation10 + $0x78] sm:$0xff] }
0x2b3c   :  { %3205 = vmatpush3.bf16.msra.mxu1 %v3204_v28  ;;  %v3232_v60 = vpack.c.bf16 %v2295_v41, %v2294_v46  ;;  %v2390_v26 = vld [vmem:[%s4314_s15] sm:$0xff]  ;;  %v2574_v19 = vld [vmem:[%s4318_s19 + $0x8] sm:$0xff] }
0x2b3d   :  { %3207 = vmatprep.subr.bf16.mxu1 %v3206_v29  ;;  %v2132_v33 = vpop.permute.xlu0 %2131  ;;  %v3235_v28 = vpack.c.bf16 %v2391_v39, %v2390_v26  ;;  %v2393_v29 = vld [vmem:[%s4314_s15 + $0x18] sm:$0xff]  ;;  %v2575_v26 = vld [vmem:[%s4318_s19 + $0x10] sm:$0xff] }
0x2b3e   :  { %2127 = vrot.lane.b32.xlu1 %v2114_v49, %s3554_s7  ;;  %s3555_s7 = smov 64   ;;  %v2286_v49 = vld [vmem:[#allocation10 + $0x30] sm:$0xff]  ;;  %v3238_v30 = vpack.c.bf16 %v2393_v29, %v2392_v27 }
0x2b3f   :  { %v3216_v40 = vpack.c.bf16 %v2287_v50, %v2286_v49  ;;  %v2198_v50 = vshrl.u32 %v1099_v5, 7  ;;  %v2402_v5 = vld [vmem:[%s4314_s15 + $0x60] sm:$0xff]  ;;  %v2576_v39 = vld [vmem:[%s4318_s19 + $0x18] sm:$0xff] }
0x2b40   :  { %3209 = vmatpush3.bf16.msra.mxu1 %v3208_v36  ;;  %v2396_v36 = vld [vmem:[%s4314_s15 + $0x30] sm:$0xff]  ;;  %v3274_v27 = vpack.c.bf16 %v2576_v39, %v2575_v26 }
0x2b41   :  { %3211 = vmatprep.subr.bf16.mxu1 %v3210_v20  ;;  %v2140_v11 = vpop.permute.xlu0 %2139  ;;  %v2397_v20 = vld [vmem:[%s4314_s15 + $0x38] sm:$0xff] }
0x2b42   :  { %2135 = vrot.lane.b32.xlu1 %v2118_v47, %s3555_s7  ;;  %v3218_v47 = vpack.c.bf16 %v2305_v53, %v2304_v52  ;;  %v3244_v21 = vpack.c.bf16 %v2397_v20, %v2396_v36  ;;  %v2195_v52 = vld [vmem:[%s4311_s12] sm:$0x3]  ;;  %v2203_v53 = vsub.s32 1, %v2198_v50 }
0x2b43   :  { %v2797_v20 = vld [vmem:[%s4319_s20] ss:$0 sm:$0xff] }
0x2b44   :  { %3213 = vmatpush3.bf16.msra.mxu1 %v3212_v43  ;;  %v2400_v43 = vld [vmem:[%s4314_s15 + $0x50] sm:$0xff] }
0x2b45   :  { %3215 = vmatprep.subr.bf16.mxu1 %v3214_v48  ;;  %v2401_v48 = vld [vmem:[%s4314_s15 + $0x58] sm:$0xff] }
0x2b46   :  { %2143 = vrot.lane.b32.xlu1 %v2120_v24, %s3547_s6  ;;  %v2290_v24 = vld [vmem:[#allocation10 + $0x50] sm:$0xff]  ;;  %v3250_v49 = vpack.c.bf16 %v2401_v48, %v2400_v43 }
0x2b47   :  { %v3224_v45 = vpack.c.bf16 %v2291_v44, %v2290_v24  ;;  %v2404_v44 = vld [vmem:[%s4314_s15 + $0x70] sm:$0xff] }
0x2b48   :  { %3217 = vmatpush3.bf16.msra.mxu1 %v3216_v40  ;;  %v2204_v40 = vrot.slane %v2195_v52, %v2203_v53  ;;  %v3256_v0 = vpack.c.bf16 %v2405_v63, %v2404_v44 }
0x2b49   :  { %3219 = vmatprep.subr.bf16.mxu1 %v3218_v47 }
0x2b4c   :  { %3221 = vmatpush3.bf16.msra.mxu1 %v3220_v61 }
0x2b4d   :  { %3223 = vmatprep.subr.bf16.mxu1 %v3222_v2  ;;  %v2403_v2 = vld [vmem:[%s4314_s15 + $0x68] sm:$0xff] }
0x2b4e   :  { %v3253_v24 = vpack.c.bf16 %v2403_v2, %v2402_v5 }
0x2b50   :  { %3225 = vmatpush3.bf16.msra.mxu1 %v3224_v45  ;;  %v2484_v45 = vld [vmem:[%s4316_s17] sm:$0xff] }
0x2b51   :  { %3227 = vmatprep.subr.bf16.mxu1 %v3226_v1  ;;  %v2485_v1 = vld [vmem:[%s4316_s17 + $0x8] sm:$0xff] }
0x2b54   :  { %3229 = vmatpush3.bf16.msra.mxu1 %v3228_v16  ;;  %v2573_v16 = vld [vmem:[%s4318_s19] sm:$0xff] }
0x2b55   :  { %3231 = vmatprep.subr.bf16.mxu1 %v3230_v25  ;;  %v3271_v41 = vpack.c.bf16 %v2574_v19, %v2573_v16 }
0x2b58   :  { %3233 = vmatpush3.bf16.msra.mxu1 %v3232_v60 }
0x2b59   :  { %3258 = vmatprep.subr.bf16.mxu1 %v3548_v32 }
0x2bac   :  { %v2106_v51 = vpop.permute.xlu1 %2105 }
0x2bad   :  { %v2121_v54 = vsel %vm1101_vm4, %v2106_v51, %v3948_v62  ;;  %v2108_v4 = vsel %vm1101_vm4, %v3948_v62, %v2106_v51  ;;  %v2199_v51 = vsub.s32 0, %v2198_v50 }
0x2bae   :  { %2147 = vrot.lane.b32.xlu0 %v2121_v54, %s3556_s11  ;;  %v2150_v7 = vsel %vm348_vm3, %v2108_v4, %v2124_v18  ;;  %v2486_v18 = vld [vmem:[%s4316_s17 + $0x10] sm:$0xff]  ;;  %v2487_v4 = vld [vmem:[%s4316_s17 + $0x18] sm:$0xff] }
0x2baf   :  { %v2200_v54 = vrot.slane %v2195_v52, %v2199_v51 }
0x2bb0   :  { %v2128_v3 = vpop.permute.xlu1 %2127 }
0x2bb1   :  { %v2152_v9 = vsel %vm2151_vm7, %v2150_v7, %v2128_v3  ;;  %v3259_v3 = vpack.c.bf16 %v2485_v1, %v2484_v45  ;;  %v2488_v7 = vld [vmem:[%s4316_s17 + $0x20] sm:$0xff] }
0x2bb2   :  { %v2154_v10 = vsel %vm2153_vm8, %v2152_v9, %v2132_v33  ;;  %v3262_v33 = vpack.c.bf16 %v2487_v4, %v2486_v18 }
0x2bb4   :  { %v2136_v8 = vpop.permute.xlu1 %2135 }
0x2bb5   :  { %v2156_v12 = vsel %vm2155_vm9, %v2154_v10, %v2136_v8  ;;  %v2489_v8 = vld [vmem:[%s4316_s17 + $0x28] sm:$0xff] }
0x2bb6   :  { %v2158_v14 = vsel %vm2157_vm10, %v2156_v12, %v2140_v11  ;;  %v3265_v9 = vpack.c.bf16 %v2489_v8, %v2488_v7  ;;  %v2793_v11 = vld [vmem:[%s4313_s14] ss:$0 sm:$0xff] }
0x2bb8   :  { %v2144_v13 = vpop.permute.xlu1 %2143 }
0x2bb9   :  { %v2160_v6 = vsel %vm2159_vm11, %v2158_v14, %v2144_v13 }
0x2c20   :  { %v2148_v62 = vpop.permute.xlu0 %2147 }
0x2c21   :  { %v2162_v59 = vsel %vm2161_vm12, %v2160_v6, %v2148_v62  ;;  %v2490_v62 = vld [vmem:[%s4316_s17 + $0x30] sm:$0xff] }
0x2c22   :  { %2272 = vmatmul.mubr.f32.vlgmr.msra.gmra.mrb[18].mxu0 %v2162_v59  ;;  %v2491_v59 = vld [vmem:[%s4316_s17 + $0x38] sm:$0xff] }
0x2c23   :  { %3080 = vmatprep.mubr.msk.f32.mxu0 %vm3549_vm2, %v3550_v34  ;;  %3236 = vmatpush3.bf16.msra.mxu0 %v3235_v28  ;;  %v3268_v17 = vpack.c.bf16 %v2491_v59, %v2490_v62  ;;  %v2795_v28 = vld [vmem:[%s4317_s18] ss:$0 sm:$0xff] }
0x2c24   :  { %3237 = vmatprep.subr.bf16.mxu0 %v3548_v32 }
0x2c27   :  { %3239 = vmatpush3.bf16.msra.mxu0 %v3238_v30 }
0x2c28   :  { %3240 = vmatprep.subr.bf16.mxu0 %v3548_v32 }
0x2c2b   :  { %3242 = vmatpush3.bf16.msra.mxu0 %v3241_v35  ;;  %v2658_v35 = vld [vmem:[%s4320_s21] sm:$0xff] }
0x2c2c   :  { %3243 = vmatprep.subr.bf16.mxu0 %v3548_v32 }
0x2c2f   :  { %3245 = vmatpush3.bf16.msra.mxu0 %v3244_v21 }
0x2c30   :  { %3246 = vmatprep.subr.bf16.mxu0 %v3548_v32 }
0x2c33   :  { %3248 = vmatpush3.bf16.msra.mxu0 %v3247_v42 }
0x2c34   :  { %3249 = vmatprep.subr.bf16.mxu0 %v3548_v32 }
0x2c37   :  { %3251 = vmatpush3.bf16.msra.mxu0 %v3250_v49 }
0x2c38   :  { %3252 = vmatprep.subr.bf16.mxu0 %v3548_v32 }
0x2c3b   :  { %3254 = vmatpush3.bf16.msra.mxu0 %v3253_v24 }
0x2c3c   :  { %3255 = vmatprep.subr.bf16.mxu0 %v3548_v32 }
0x2c3f   :  { %3257 = vmatpush3.bf16.msra.mxu0 %v3256_v0 }
0x2cf5   :  { %v2273_v47 = vpop.f32.mrb[18].mxu0 }
0x2cf6   :  { %v2274_v55 = vadd.f32 %v2273_v47, %v2200_v54  ;;  %v2275_v57 = vpop.f32.mrb[19].mxu0 }
0x2cf7   :  { %v2276_v22 = vadd.f32 %v2275_v57, %v2204_v40 }
0x2cf8   :  { %v2278_v61 = vmax.f32 %v2274_v55, 0.0 }
0x2cf9   :  { %v2279_v58 = vmax.f32 %v2276_v22, 0.0 }
0x2cfb   :  { %2383 = vmatprep.mubr.f32.mxu1 %v2279_v58 }
0x2cfc   :  { %2384 = vmatmul.mubr.f32.vlgmr.msra.gmra.mrb[18].mxu1 %v2278_v61 }
0x2cfd   :  { %3099 = vmatprep.mubr.msk.f32.mxu1 %vm3549_vm2, %v3550_v34  ;;  %3260 = vmatpush3.bf16.msra.mxu1 %v3259_v3 }
0x2cfe   :  { %3261 = vmatprep.subr.bf16.mxu1 %v3548_v32 }
0x2d01   :  { %3263 = vmatpush3.bf16.msra.mxu1 %v3262_v33 }
0x2d02   :  { %3264 = vmatprep.subr.bf16.mxu1 %v3548_v32 }
0x2d05   :  { %3266 = vmatpush3.bf16.msra.mxu1 %v3265_v9 }
0x2d06   :  { %3267 = vmatprep.subr.bf16.mxu1 %v3548_v32 }
0x2d09   :  { %3269 = vmatpush3.bf16.msra.mxu1 %v3268_v17 }
0x2d0a   :  { %3270 = vmatprep.subr.bf16.mxu1 %v3548_v32 }
0x2dcf   :  { %v2889_v10 = vpop.f32.mrb[18].mxu1 }
0x2dd0   :  { %v2890_v12 = vpop.f32.mrb[19].mxu1 }
0x2dd1   :  { %v2891_v13 = vadd.f32 %v2890_v12, %v2889_v10 }
0x2dd3   :  { %v2386_v14 = vadd.f32 %v2891_v13, %v2793_v11 }
0x2dd5   :  { %v2389_v6 = vmax.f32 %v2386_v14, 0.0 }
0x2dd7   :  { %3081 = vmatmul.mubr.f32.vlgmr.msra.gmra.mrb[20].mxu0 %v2389_v6 }
0x2eaa   :  { %v2479_v23 = vpop.f32.mrb[20].mxu0 }
0x2eab   :  { %v2480_v25 = vadd.f32 %v2794_v15, %v2479_v23  ;;  %v3082_v46 = vpop.f32.mrb[21].mxu0 }
0x2ead   :  { %v2483_v60 = vmax.f32 %v2480_v25, 0.0 }
0x2eaf   :  { %3100 = vmatmul.mubr.msk.f32.vlgmr.msra.gmra.mrb[20].mxu1 %vm2155_vm9, %v2483_v60 }
0x2eb0   :  { %3272 = vmatpush3.bf16.msra.mxu1 %v3271_v41  ;;  %3110 = vmatprep.mubr.msk.f32.mxu1 %vm3549_vm2, %v3550_v34 }
0x2eb1   :  { %3273 = vmatprep.subr.bf16.mxu1 %v3548_v32 }
0x2eb4   :  { %3275 = vmatpush3.bf16.msra.mxu1 %v3274_v27 }
0x2eb5   :  { %3276 = vmatprep.subr.bf16.mxu1 %v3548_v32  ;;  %v2659_v32 = vld [vmem:[%s4320_s21 + $0x8] sm:$0xff] }
0x2eb6   :  { %v3277_v36 = vpack.c.bf16 %v2659_v32, %v2658_v35 }
0x2f82   :  { %v2568_v29 = vpop.f32.mrb[20].mxu1 }
0x2f83   :  { %v2569_v30 = vadd.f32 %v2795_v28, %v2568_v29  ;;  %v3101_v31 = vpop.f32.mrb[21].mxu1 }
0x2f85   :  { %v2572_v56 = vmax.f32 %v2569_v30, 0.0 }
0x2f87   :  { %3111 = vmatmul.mubr.msk.f32.vlgmr.msra.gmra.mrb[22].mxu1 %vm2151_vm7, %v2572_v56 }
0x2f88   :  { %3117 = vmatprep.mubr.msk.f32.mxu1 %vm3549_vm2, %v3550_v34  ;;  %3278 = vmatpush3.bf16.msra.mxu1 %v3277_v36  ;;  %v2799_v34 = vld [vmem:[#allocation2] ss:$0 sm:$0xff] }
0x305a   :  { %v2653_v21 = vpop.f32.mrb[22].mxu1 }
0x305b   :  { %v2654_v37 = vadd.f32 %v2797_v20, %v2653_v21  ;;  %v3112_v38 = vpop.f32.mrb[23].mxu1 }
0x305d   :  { %v2657_v42 = vmax.f32 %v2654_v37, 0.0 }
0x305f   :  { %3118 = vmatmul.mubr.msk.f32.vlgmr.msra.gmra.mrb[24].mxu1 %vm348_vm3, %v2657_v42 }
0x3132   :  { %v2736_v43 = vpop.f32.mrb[24].mxu1 }
0x3133   :  { %v2737_v48 = vadd.f32 %v2799_v34, %v2736_v43  ;;  %v3119_v49 = vpop.f32.mrb[25].mxu1 }
0x3135   :  { %2741 = vst.msk [vmem:[%s4322_s23] sm:$0x3] %vm2740_vm13, %v2737_v48 }
0x3136   :  { %2746 = vsyncpa [#allocation4], 1 }
0x3137   :  { %2747 = vsyncpa [#allocation6], 1 }
0x3138   :  { %2748 = vsyncpa [#allocation9], 1 }

</bundles_post_ra>
